<compile_context>
chip_gen: v5e
topology: v5e:2x2
jax: 0.10.0
libtpu: 0.0.40
codegen_flags: <defaults>
</compile_context>

<pallas_src>
import functools

import jax
import jax.numpy as jnp
from jax import lax
from jax.experimental import pallas as pl
from jax.experimental.pallas import tpu as pltpu


# ------------------------------ fused kernel --------------------------------

def _s2s_fused_kernel(x_ref, len_ref, maxlen_ref, h0_ref, c0_ref, mask_ref,
                      wcoord_ref, bcoord_ref,
                      wih_ref, whh_ref, benc_ref,
                      wk_ref, bk_ref, wq_ref, bq_ref,
                      wdx_ref, wda_ref, wdh_ref, bdec_ref,
                      wout_ref, bout_ref,
                      coords_ref,
                      *, seq_len, bn_pad, hidden, pred_len, scale):
    H = hidden
    lengths = len_ref[...]                       # (BNpad, 1) int32
    maxlen = maxlen_ref[0]                       # scalar int32 (SMEM)

    wcoord = wcoord_ref[...]
    bcoord = bcoord_ref[...]

    # ---- coordinates embedding for ALL timesteps with one matmul, then the
    #      loop-invariant x -> gates term (bias folded in once). ----
    x_e_all = jnp.maximum(
        jnp.dot(x_ref[...], wcoord, preferred_element_type=jnp.float32)
        + bcoord, 0.0)                                          # (S*BNpad, E)
    gx_all = (jnp.dot(x_e_all, wih_ref[...],
                      preferred_element_type=jnp.float32)
              + benc_ref[...])                                  # (S*BNpad, 4H)
    whh = whh_ref[...]

    def lstm_gates(gates, c_prev):
        # one sigmoid + one tanh over the full 4H-lane gates slab
        sg = jax.nn.sigmoid(gates)
        tg = jnp.tanh(gates)
        c_new = sg[:, H:2 * H] * c_prev + sg[:, 0:H] * tg[:, 2 * H:3 * H]
        h_new = sg[:, 3 * H:4 * H] * jnp.tanh(c_new)
        return h_new, c_new

    # ---- encoder LSTM, fully unrolled over time (pack_padded via masking) --
    h = h0_ref[...]
    c = c0_ref[...]
    out_last = jnp.zeros_like(h)
    for t in range(seq_len):
        gates = (gx_all[t * bn_pad:(t + 1) * bn_pad, :]
                 + jnp.dot(h, whh, preferred_element_type=jnp.float32))
        h_new, c_new = lstm_gates(gates, c)
        valid = t < lengths                                     # (BNpad, 1)
        h = jnp.where(valid, h_new, h)                          # freeze state
        c = jnp.where(valid, c_new, c)
        out_t = jnp.where(valid, h_new, 0.0)                    # zero outputs
        out_last = jnp.where(t == maxlen - 1, out_t, out_last)  # x[:, -1, :]

    # ---- k/v and q projections, hoisted out of the prediction loop
    #      (h_n never changes; reference bug reproduced deliberately). ----
    kv = jnp.maximum(
        jnp.dot(out_last, wk_ref[...], preferred_element_type=jnp.float32)
        + bk_ref[...], 0.0)                                     # (BNpad, F)
    q = jnp.maximum(
        jnp.dot(h, wq_ref[...], preferred_element_type=jnp.float32)
        + bq_ref[...], 0.0)                                     # (BNpad, F)

    # ---- social attention over agents, all batches at once via a
    #      block-diagonal same-batch / active-key mask. ----
    # TODO(synk): soft_attention.SoftAttention source (projection_layers) is
    # not available; a masked scaled-dot-product attention over agents is used.
    s = lax.dot_general(q, kv, (((1,), (1,)), ((), ())),
                        preferred_element_type=jnp.float32) * scale
    s = jnp.where(mask_ref[...] > 0.5, s, -1e9)
    s = s - jnp.max(s, axis=-1, keepdims=True)
    e = jnp.exp(s)
    att = jnp.dot(e / jnp.sum(e, axis=-1, keepdims=True), kv,
                  preferred_element_type=jnp.float32)           # (BNpad, F)

    # ---- decoder: att/h/bias gate contributions are loop-invariant ----
    gates_base = (jnp.dot(att, wda_ref[...], preferred_element_type=jnp.float32)
                  + jnp.dot(h, wdh_ref[...], preferred_element_type=jnp.float32)
                  + bdec_ref[...])                              # (BNpad, 4H)
    wdx = wdx_ref[...]
    wout = wout_ref[...]
    bout = bout_ref[...]
    out_e = x_e_all[(seq_len - 1) * bn_pad:, :]                 # x_e[:, :, -1]

    coords = []
    for _ in range(pred_len):
        gates = jnp.dot(out_e, wdx,
                        preferred_element_type=jnp.float32) + gates_base
        h_dec, _ = lstm_gates(gates, c)       # (h_n, c_n) reused every step
        coord = jnp.dot(h_dec, wout,
                        preferred_element_type=jnp.float32) + bout
        coords.append(coord)
        # condition_decoder_on_outputs=True: re-embed predicted coordinates
        out_e = jnp.maximum(
            jnp.dot(coord, wcoord, preferred_element_type=jnp.float32)
            + bcoord, 0.0)

    # single lane-dense store of the whole prediction slab
    coords_ref[...] = jnp.concatenate(coords, axis=1)           # (BNpad, P*Do)


# ------------------------------ model wrapper -------------------------------

def init_params(key, cfg):
    D_in, E = cfg["input_dim"], cfg["embedding_size"]
    H, F = cfg["enc_hidden_size"], cfg["enc_feat_embedding"]
    Do = cfg["output_size"]
    ks = jax.random.split(key, 14)

    def w(k, shape):
        return 0.1 * jax.random.normal(k, shape, jnp.float32)

    return dict(
        coord_w=w(ks[0], (D_in, E)), coord_b=w(ks[1], (E,)),
        k_w=w(ks[2], (H, F)), k_b=w(ks[3], (F,)),
        q_w=w(ks[4], (H, F)), q_b=w(ks[5], (F,)),
        out_w=w(ks[6], (H, Do)), out_b=w(ks[7], (Do,)),
        enc_w_ih=w(ks[8], (E, 4 * H)), enc_w_hh=w(ks[9], (H, 4 * H)),
        enc_b=w(ks[10], (4 * H,)),
        dec_w_ih=w(ks[11], (F + E, 4 * H)), dec_w_hh=w(ks[12], (H, 4 * H)),
        dec_b=w(ks[13], (4 * H,)),
    )


def s2s_social_att_forward(params, x_traj, points_mask_in, points_mask,
                           h0, c0, cfg):
    B, N, S, D_in = x_traj.shape
    E = cfg["embedding_size"]
    H = cfg["enc_hidden_size"]
    F = cfg["enc_feat_embedding"]
    Do = cfg["output_size"]
    P = cfg["pred_length"]
    BN = B * N
    BN_pad = -(-BN // 8) * 8                     # pad rows to sublane multiple
    pad = BN_pad - BN

    # time-major (S, BNpad, Din) flattened to a (S*BNpad, Din) row slab so
    # every encoder step is a sublane-aligned static slice.
    x_seq = jnp.transpose(x_traj.reshape(BN, S, D_in), (1, 0, 2))
    x_seq = jnp.pad(x_seq, ((0, 0), (0, pad), (0, 0))).reshape(S * BN_pad, D_in)

    # sequence lengths (clamped to >= 1, as in the reference)
    lengths = jnp.sum(points_mask_in[:, :, :, 0], axis=-1).reshape(BN)
    lengths = lengths + (lengths == 0).astype(lengths.dtype)
    lengths = lengths.astype(jnp.int32)
    maxlen = jnp.max(lengths).reshape(1)
    lengths_p = jnp.pad(lengths, (0, pad), constant_values=1).reshape(BN_pad, 1)
    # NOTE: the reference sorts by length only to satisfy pack_padded_sequence
    # and then unsorts; with in-kernel masking the sort is an identity.

    h0p = jnp.pad(h0, ((0, pad), (0, 0)))
    c0p = jnp.pad(c0, ((0, pad), (0, 0)))

    # block-diagonal (same-batch) x (active key agent) attention mask
    agent_active = (jnp.sum(points_mask, axis=(2, 3)) > 0)
    agent_active = agent_active.astype(jnp.float32).reshape(BN)
    batch_id = jnp.arange(BN) // N
    att_mask = ((batch_id[:, None] == batch_id[None, :]).astype(jnp.float32)
                * agent_active[None, :])
    att_mask = jnp.pad(att_mask, ((0, pad), (0, pad)))

    vmem = pl.BlockSpec(memory_space=pltpu.MemorySpace.VMEM)
    smem = pl.BlockSpec(memory_space=pltpu.MemorySpace.SMEM)

    kernel = functools.partial(
        _s2s_fused_kernel, seq_len=S, bn_pad=BN_pad, hidden=H, pred_len=P,
        scale=1.0 / float(F) ** 0.5)

    coords = pl.pallas_call(
        kernel,
        out_shape=jax.ShapeDtypeStruct((BN_pad, P * Do), jnp.float32),
        in_specs=[vmem, vmem, smem, vmem, vmem, vmem,      # data / state / mask
                  vmem, vmem,                              # coord embedding
                  vmem, vmem, vmem,                        # encoder LSTM
                  vmem, vmem, vmem, vmem,                  # k / q projections
                  vmem, vmem, vmem, vmem,                  # decoder LSTM
                  vmem, vmem],                             # hdec2coord
        out_specs=vmem,
    )(x_seq, lengths_p, maxlen, h0p, c0p, att_mask,
      params["coord_w"], params["coord_b"].reshape(1, E),
      params["enc_w_ih"], params["enc_w_hh"], params["enc_b"].reshape(1, 4 * H),
      params["k_w"], params["k_b"].reshape(1, F),
      params["q_w"], params["q_b"].reshape(1, F),
      params["dec_w_ih"][:E], params["dec_w_ih"][E:],      # out_e- / att-rows
      params["dec_w_hh"], params["dec_b"].reshape(1, 4 * H),
      params["out_w"], params["out_b"].reshape(1, Do))

    return coords[:BN].reshape(B, N, P, Do)


# ---------------------------------- main ------------------------------------

if __name__ == "__main__":
    cfg = dict(input_dim=2, embedding_size=16, enc_hidden_size=32,
               enc_num_layers=1, enc_feat_embedding=16, output_size=2,
               pred_length=4, condition_decoder_on_outputs=True,
               joint_optimisation=True)
    B, N, S = 2, 3, 8

    key = jax.random.PRNGKey(0)
    k_traj, k_h0, k_c0, k_par = jax.random.split(key, 4)

    x_traj = jax.random.normal(k_traj, (B, N, S, cfg["input_dim"]), jnp.float32)

    # deterministic per-agent observed lengths -> input points mask
    lens = jnp.array([[8, 5, 3], [7, 1, 6]], dtype=jnp.int32)    # (B, N)
    mask_in = (jnp.arange(S)[None, None, :] < lens[:, :, None]).astype(jnp.float32)
    points_mask_in = jnp.broadcast_to(mask_in[..., None],
                                      (B, N, S, cfg["input_dim"]))
    x_traj = x_traj * points_mask_in          # padded timesteps are zero

    points_mask = jnp.ones((B, N, cfg["pred_length"], cfg["input_dim"]),
                           jnp.float32)
    points_mask = points_mask.at[1, 1].set(0.0)   # one fully inactive agent

    # encoderLSTM.init_hidden_state uses torch.rand -> deterministic uniform here
    h0 = jax.random.uniform(k_h0, (B * N, cfg["enc_hidden_size"]), jnp.float32)
    c0 = jax.random.uniform(k_c0, (B * N, cfg["enc_hidden_size"]), jnp.float32)

    params = init_params(k_par, cfg)

    out = s2s_social_att_forward(params, x_traj, points_mask_in, points_mask,
                                 h0, c0, cfg)
    out = jax.block_until_ready(out)
    assert out.shape == (B, N, cfg["pred_length"], cfg["input_dim"])
    assert jnp.all(jnp.isfinite(out))
    print("KERNEL_OK")
</pallas_src>

<mosaic_0001>
module attributes {stable_mosaic.version = 11 : i64} {
  func.func @_s2s_fused_kernel(%arg0: memref<64x2xf32, #tpu.memory_space<vmem>>, %arg1: memref<8x1xi32, #tpu.memory_space<vmem>>, %arg2: memref<1xi32, #tpu.memory_space<smem>>, %arg3: memref<8x32xf32, #tpu.memory_space<vmem>>, %arg4: memref<8x32xf32, #tpu.memory_space<vmem>>, %arg5: memref<8x8xf32, #tpu.memory_space<vmem>>, %arg6: memref<2x16xf32, #tpu.memory_space<vmem>>, %arg7: memref<1x16xf32, #tpu.memory_space<vmem>>, %arg8: memref<16x128xf32, #tpu.memory_space<vmem>>, %arg9: memref<32x128xf32, #tpu.memory_space<vmem>>, %arg10: memref<1x128xf32, #tpu.memory_space<vmem>>, %arg11: memref<32x16xf32, #tpu.memory_space<vmem>>, %arg12: memref<1x16xf32, #tpu.memory_space<vmem>>, %arg13: memref<32x16xf32, #tpu.memory_space<vmem>>, %arg14: memref<1x16xf32, #tpu.memory_space<vmem>>, %arg15: memref<16x128xf32, #tpu.memory_space<vmem>>, %arg16: memref<16x128xf32, #tpu.memory_space<vmem>>, %arg17: memref<32x128xf32, #tpu.memory_space<vmem>>, %arg18: memref<1x128xf32, #tpu.memory_space<vmem>>, %arg19: memref<32x2xf32, #tpu.memory_space<vmem>>, %arg20: memref<1x2xf32, #tpu.memory_space<vmem>>, %arg21: memref<8x8xf32, #tpu.memory_space<vmem>>) attributes {dimension_semantics = [], scalar_prefetch = 0 : i64, scratch_operands = 0 : i64, tpu.core_type = #tpu.core_type<tc>} {
    %c0 = arith.constant 0 : index
    %c0_0 = arith.constant 0 : index
    %0 = vector.load %arg1[%c0, %c0_0] : memref<8x1xi32, #tpu.memory_space<vmem>>, vector<8x1xi32>
    %c0_1 = arith.constant 0 : index
    %1 = memref.load %arg2[%c0_1] : memref<1xi32, #tpu.memory_space<smem>>
    %c0_2 = arith.constant 0 : index
    %c0_3 = arith.constant 0 : index
    %2 = vector.load %arg6[%c0_2, %c0_3] : memref<2x16xf32, #tpu.memory_space<vmem>>, vector<2x16xf32>
    %c0_4 = arith.constant 0 : index
    %c0_5 = arith.constant 0 : index
    %3 = vector.load %arg7[%c0_4, %c0_5] : memref<1x16xf32, #tpu.memory_space<vmem>>, vector<1x16xf32>
    %c0_6 = arith.constant 0 : index
    %c0_7 = arith.constant 0 : index
    %4 = vector.load %arg0[%c0_6, %c0_7] : memref<64x2xf32, #tpu.memory_space<vmem>>, vector<64x2xf32>
    %cst = arith.constant dense<0.000000e+00> : vector<64x16xf32>
    %5 = tpu.matmul %4, %2, %cst {dimension_numbers = #tpu.dot_dimension_numbers<[1], [0], [0], [1], [0, 0, 1, 1], [], []>} : vector<64x2xf32>, vector<2x16xf32>, vector<64x16xf32> -> vector<64x16xf32>
    %6 = vector.broadcast %3 : vector<1x16xf32> to vector<64x16xf32>
    %7 = arith.addf %5, %6 : vector<64x16xf32>
    %cst_8 = arith.constant 0.000000e+00 : f32
    %8 = vector.broadcast %cst_8 : f32 to vector<64x16xf32>
    %9 = arith.maximumf %7, %8 : vector<64x16xf32>
    %c0_9 = arith.constant 0 : index
    %c0_10 = arith.constant 0 : index
    %10 = vector.load %arg8[%c0_9, %c0_10] : memref<16x128xf32, #tpu.memory_space<vmem>>, vector<16x128xf32>
    %cst_11 = arith.constant dense<0.000000e+00> : vector<64x128xf32>
    %11 = tpu.matmul %9, %10, %cst_11 {dimension_numbers = #tpu.dot_dimension_numbers<[1], [0], [0], [1], [0, 0, 1, 1], [], []>} : vector<64x16xf32>, vector<16x128xf32>, vector<64x128xf32> -> vector<64x128xf32>
    %c0_12 = arith.constant 0 : index
    %c0_13 = arith.constant 0 : index
    %12 = vector.load %arg10[%c0_12, %c0_13] : memref<1x128xf32, #tpu.memory_space<vmem>>, vector<1x128xf32>
    %13 = vector.broadcast %12 : vector<1x128xf32> to vector<64x128xf32>
    %14 = arith.addf %11, %13 : vector<64x128xf32>
    %c0_14 = arith.constant 0 : index
    %c0_15 = arith.constant 0 : index
    %15 = vector.load %arg9[%c0_14, %c0_15] : memref<32x128xf32, #tpu.memory_space<vmem>>, vector<32x128xf32>
    %c0_16 = arith.constant 0 : index
    %c0_17 = arith.constant 0 : index
    %16 = vector.load %arg3[%c0_16, %c0_17] : memref<8x32xf32, #tpu.memory_space<vmem>>, vector<8x32xf32>
    %c0_18 = arith.constant 0 : index
    %c0_19 = arith.constant 0 : index
    %17 = vector.load %arg4[%c0_18, %c0_19] : memref<8x32xf32, #tpu.memory_space<vmem>>, vector<8x32xf32>
    %cst_20 = arith.constant 0.000000e+00 : f32
    %18 = vector.broadcast %cst_20 : f32 to vector<8x32xf32>
    %19 = vector.extract_strided_slice %14 {offsets = [0, 0], sizes = [8, 128], strides = [1, 1]} : vector<64x128xf32> to vector<8x128xf32>
    %cst_21 = arith.constant dense<0.000000e+00> : vector<8x128xf32>
    %20 = tpu.matmul %16, %15, %cst_21 {dimension_numbers = #tpu.dot_dimension_numbers<[1], [0], [0], [1], [0, 0, 1, 1], [], []>} : vector<8x32xf32>, vector<32x128xf32>, vector<8x128xf32> -> vector<8x128xf32>
    %21 = arith.addf %19, %20 : vector<8x128xf32>
    %22 = arith.negf %21 : vector<8x128xf32>
    %23 = math.exp %22 : vector<8x128xf32>
    %cst_22 = arith.constant 1.000000e+00 : f32
    %24 = vector.broadcast %cst_22 : f32 to vector<8x128xf32>
    %25 = arith.addf %24, %23 : vector<8x128xf32>
    %26 = arith.divf %24, %25 : vector<8x128xf32>
    %27 = math.tanh %21 : vector<8x128xf32>
    %28 = vector.extract_strided_slice %26 {offsets = [0, 32], sizes = [8, 32], strides = [1, 1]} : vector<8x128xf32> to vector<8x32xf32>
    %29 = arith.mulf %28, %17 : vector<8x32xf32>
    %30 = vector.extract_strided_slice %26 {offsets = [0, 0], sizes = [8, 32], strides = [1, 1]} : vector<8x128xf32> to vector<8x32xf32>
    %31 = vector.extract_strided_slice %27 {offsets = [0, 64], sizes = [8, 32], strides = [1, 1]} : vector<8x128xf32> to vector<8x32xf32>
    %32 = arith.mulf %30, %31 : vector<8x32xf32>
    %33 = arith.addf %29, %32 : vector<8x32xf32>
    %34 = vector.extract_strided_slice %26 {offsets = [0, 96], sizes = [8, 32], strides = [1, 1]} : vector<8x128xf32> to vector<8x32xf32>
    %35 = math.tanh %33 : vector<8x32xf32>
    %36 = arith.mulf %34, %35 : vector<8x32xf32>
    %c0_i32 = arith.constant 0 : i32
    %37 = vector.broadcast %c0_i32 : i32 to vector<8x1xi32>
    %38 = arith.cmpi sgt, %0, %37 : vector<8x1xi32>
    %39 = vector.shape_cast %38 : vector<8x1xi1> to vector<8x1xi1>
    %40 = vector.broadcast %39 : vector<8x1xi1> to vector<8x32xi1>
    %41 = arith.select %40, %36, %16 : vector<8x32xi1>, vector<8x32xf32>
    %42 = vector.shape_cast %38 : vector<8x1xi1> to vector<8x1xi1>
    %43 = vector.broadcast %42 : vector<8x1xi1> to vector<8x32xi1>
    %44 = arith.select %43, %33, %17 : vector<8x32xi1>, vector<8x32xf32>
    %cst_23 = arith.constant 0.000000e+00 : f32
    %45 = vector.shape_cast %38 : vector<8x1xi1> to vector<8x1xi1>
    %46 = vector.broadcast %45 : vector<8x1xi1> to vector<8x32xi1>
    %47 = vector.broadcast %cst_23 : f32 to vector<8x32xf32>
    %48 = arith.select %46, %36, %47 : vector<8x32xi1>, vector<8x32xf32>
    %c1_i32 = arith.constant 1 : i32
    %49 = arith.subi %1, %c1_i32 : i32
    %c0_i32_24 = arith.constant 0 : i32
    %50 = arith.cmpi eq, %49, %c0_i32_24 : i32
    %51 = arith.select %50, %48, %18 : vector<8x32xf32>
    %52 = vector.extract_strided_slice %14 {offsets = [8, 0], sizes = [8, 128], strides = [1, 1]} : vector<64x128xf32> to vector<8x128xf32>
    %cst_25 = arith.constant dense<0.000000e+00> : vector<8x128xf32>
    %53 = tpu.matmul %41, %15, %cst_25 {dimension_numbers = #tpu.dot_dimension_numbers<[1], [0], [0], [1], [0, 0, 1, 1], [], []>} : vector<8x32xf32>, vector<32x128xf32>, vector<8x128xf32> -> vector<8x128xf32>
    %54 = arith.addf %52, %53 : vector<8x128xf32>
    %55 = arith.negf %54 : vector<8x128xf32>
    %56 = math.exp %55 : vector<8x128xf32>
    %cst_26 = arith.constant 1.000000e+00 : f32
    %57 = vector.broadcast %cst_26 : f32 to vector<8x128xf32>
    %58 = arith.addf %57, %56 : vector<8x128xf32>
    %59 = arith.divf %57, %58 : vector<8x128xf32>
    %60 = math.tanh %54 : vector<8x128xf32>
    %61 = vector.extract_strided_slice %59 {offsets = [0, 32], sizes = [8, 32], strides = [1, 1]} : vector<8x128xf32> to vector<8x32xf32>
    %62 = arith.mulf %61, %44 : vector<8x32xf32>
    %63 = vector.extract_strided_slice %59 {offsets = [0, 0], sizes = [8, 32], strides = [1, 1]} : vector<8x128xf32> to vector<8x32xf32>
    %64 = vector.extract_strided_slice %60 {offsets = [0, 64], sizes = [8, 32], strides = [1, 1]} : vector<8x128xf32> to vector<8x32xf32>
    %65 = arith.mulf %63, %64 : vector<8x32xf32>
    %66 = arith.addf %62, %65 : vector<8x32xf32>
    %67 = vector.extract_strided_slice %59 {offsets = [0, 96], sizes = [8, 32], strides = [1, 1]} : vector<8x128xf32> to vector<8x32xf32>
    %68 = math.tanh %66 : vector<8x32xf32>
    %69 = arith.mulf %67, %68 : vector<8x32xf32>
    %c1_i32_27 = arith.constant 1 : i32
    %70 = vector.broadcast %c1_i32_27 : i32 to vector<8x1xi32>
    %71 = arith.cmpi sgt, %0, %70 : vector<8x1xi32>
    %72 = vector.shape_cast %71 : vector<8x1xi1> to vector<8x1xi1>
    %73 = vector.broadcast %72 : vector<8x1xi1> to vector<8x32xi1>
    %74 = arith.select %73, %69, %41 : vector<8x32xi1>, vector<8x32xf32>
    %75 = vector.shape_cast %71 : vector<8x1xi1> to vector<8x1xi1>
    %76 = vector.broadcast %75 : vector<8x1xi1> to vector<8x32xi1>
    %77 = arith.select %76, %66, %44 : vector<8x32xi1>, vector<8x32xf32>
    %cst_28 = arith.constant 0.000000e+00 : f32
    %78 = vector.shape_cast %71 : vector<8x1xi1> to vector<8x1xi1>
    %79 = vector.broadcast %78 : vector<8x1xi1> to vector<8x32xi1>
    %80 = vector.broadcast %cst_28 : f32 to vector<8x32xf32>
    %81 = arith.select %79, %69, %80 : vector<8x32xi1>, vector<8x32xf32>
    %c1_i32_29 = arith.constant 1 : i32
    %82 = arith.subi %1, %c1_i32_29 : i32
    %c1_i32_30 = arith.constant 1 : i32
    %83 = arith.cmpi eq, %82, %c1_i32_30 : i32
    %84 = arith.select %83, %81, %51 : vector<8x32xf32>
    %85 = vector.extract_strided_slice %14 {offsets = [16, 0], sizes = [8, 128], strides = [1, 1]} : vector<64x128xf32> to vector<8x128xf32>
    %cst_31 = arith.constant dense<0.000000e+00> : vector<8x128xf32>
    %86 = tpu.matmul %74, %15, %cst_31 {dimension_numbers = #tpu.dot_dimension_numbers<[1], [0], [0], [1], [0, 0, 1, 1], [], []>} : vector<8x32xf32>, vector<32x128xf32>, vector<8x128xf32> -> vector<8x128xf32>
    %87 = arith.addf %85, %86 : vector<8x128xf32>
    %88 = arith.negf %87 : vector<8x128xf32>
    %89 = math.exp %88 : vector<8x128xf32>
    %cst_32 = arith.constant 1.000000e+00 : f32
    %90 = vector.broadcast %cst_32 : f32 to vector<8x128xf32>
    %91 = arith.addf %90, %89 : vector<8x128xf32>
    %92 = arith.divf %90, %91 : vector<8x128xf32>
    %93 = math.tanh %87 : vector<8x128xf32>
    %94 = vector.extract_strided_slice %92 {offsets = [0, 32], sizes = [8, 32], strides = [1, 1]} : vector<8x128xf32> to vector<8x32xf32>
    %95 = arith.mulf %94, %77 : vector<8x32xf32>
    %96 = vector.extract_strided_slice %92 {offsets = [0, 0], sizes = [8, 32], strides = [1, 1]} : vector<8x128xf32> to vector<8x32xf32>
    %97 = vector.extract_strided_slice %93 {offsets = [0, 64], sizes = [8, 32], strides = [1, 1]} : vector<8x128xf32> to vector<8x32xf32>
    %98 = arith.mulf %96, %97 : vector<8x32xf32>
    %99 = arith.addf %95, %98 : vector<8x32xf32>
    %100 = vector.extract_strided_slice %92 {offsets = [0, 96], sizes = [8, 32], strides = [1, 1]} : vector<8x128xf32> to vector<8x32xf32>
    %101 = math.tanh %99 : vector<8x32xf32>
    %102 = arith.mulf %100, %101 : vector<8x32xf32>
    %c2_i32 = arith.constant 2 : i32
    %103 = vector.broadcast %c2_i32 : i32 to vector<8x1xi32>
    %104 = arith.cmpi sgt, %0, %103 : vector<8x1xi32>
    %105 = vector.shape_cast %104 : vector<8x1xi1> to vector<8x1xi1>
    %106 = vector.broadcast %105 : vector<8x1xi1> to vector<8x32xi1>
    %107 = arith.select %106, %102, %74 : vector<8x32xi1>, vector<8x32xf32>
    %108 = vector.shape_cast %104 : vector<8x1xi1> to vector<8x1xi1>
    %109 = vector.broadcast %108 : vector<8x1xi1> to vector<8x32xi1>
    %110 = arith.select %109, %99, %77 : vector<8x32xi1>, vector<8x32xf32>
    %cst_33 = arith.constant 0.000000e+00 : f32
    %111 = vector.shape_cast %104 : vector<8x1xi1> to vector<8x1xi1>
    %112 = vector.broadcast %111 : vector<8x1xi1> to vector<8x32xi1>
    %113 = vector.broadcast %cst_33 : f32 to vector<8x32xf32>
    %114 = arith.select %112, %102, %113 : vector<8x32xi1>, vector<8x32xf32>
    %c1_i32_34 = arith.constant 1 : i32
    %115 = arith.subi %1, %c1_i32_34 : i32
    %c2_i32_35 = arith.constant 2 : i32
    %116 = arith.cmpi eq, %115, %c2_i32_35 : i32
    %117 = arith.select %116, %114, %84 : vector<8x32xf32>
    %118 = vector.extract_strided_slice %14 {offsets = [24, 0], sizes = [8, 128], strides = [1, 1]} : vector<64x128xf32> to vector<8x128xf32>
    %cst_36 = arith.constant dense<0.000000e+00> : vector<8x128xf32>
    %119 = tpu.matmul %107, %15, %cst_36 {dimension_numbers = #tpu.dot_dimension_numbers<[1], [0], [0], [1], [0, 0, 1, 1], [], []>} : vector<8x32xf32>, vector<32x128xf32>, vector<8x128xf32> -> vector<8x128xf32>
    %120 = arith.addf %118, %119 : vector<8x128xf32>
    %121 = arith.negf %120 : vector<8x128xf32>
    %122 = math.exp %121 : vector<8x128xf32>
    %cst_37 = arith.constant 1.000000e+00 : f32
    %123 = vector.broadcast %cst_37 : f32 to vector<8x128xf32>
    %124 = arith.addf %123, %122 : vector<8x128xf32>
    %125 = arith.divf %123, %124 : vector<8x128xf32>
    %126 = math.tanh %120 : vector<8x128xf32>
    %127 = vector.extract_strided_slice %125 {offsets = [0, 32], sizes = [8, 32], strides = [1, 1]} : vector<8x128xf32> to vector<8x32xf32>
    %128 = arith.mulf %127, %110 : vector<8x32xf32>
    %129 = vector.extract_strided_slice %125 {offsets = [0, 0], sizes = [8, 32], strides = [1, 1]} : vector<8x128xf32> to vector<8x32xf32>
    %130 = vector.extract_strided_slice %126 {offsets = [0, 64], sizes = [8, 32], strides = [1, 1]} : vector<8x128xf32> to vector<8x32xf32>
    %131 = arith.mulf %129, %130 : vector<8x32xf32>
    %132 = arith.addf %128, %131 : vector<8x32xf32>
    %133 = vector.extract_strided_slice %125 {offsets = [0, 96], sizes = [8, 32], strides = [1, 1]} : vector<8x128xf32> to vector<8x32xf32>
    %134 = math.tanh %132 : vector<8x32xf32>
    %135 = arith.mulf %133, %134 : vector<8x32xf32>
    %c3_i32 = arith.constant 3 : i32
    %136 = vector.broadcast %c3_i32 : i32 to vector<8x1xi32>
    %137 = arith.cmpi sgt, %0, %136 : vector<8x1xi32>
    %138 = vector.shape_cast %137 : vector<8x1xi1> to vector<8x1xi1>
    %139 = vector.broadcast %138 : vector<8x1xi1> to vector<8x32xi1>
    %140 = arith.select %139, %135, %107 : vector<8x32xi1>, vector<8x32xf32>
    %141 = vector.shape_cast %137 : vector<8x1xi1> to vector<8x1xi1>
    %142 = vector.broadcast %141 : vector<8x1xi1> to vector<8x32xi1>
    %143 = arith.select %142, %132, %110 : vector<8x32xi1>, vector<8x32xf32>
    %cst_38 = arith.constant 0.000000e+00 : f32
    %144 = vector.shape_cast %137 : vector<8x1xi1> to vector<8x1xi1>
    %145 = vector.broadcast %144 : vector<8x1xi1> to vector<8x32xi1>
    %146 = vector.broadcast %cst_38 : f32 to vector<8x32xf32>
    %147 = arith.select %145, %135, %146 : vector<8x32xi1>, vector<8x32xf32>
    %c1_i32_39 = arith.constant 1 : i32
    %148 = arith.subi %1, %c1_i32_39 : i32
    %c3_i32_40 = arith.constant 3 : i32
    %149 = arith.cmpi eq, %148, %c3_i32_40 : i32
    %150 = arith.select %149, %147, %117 : vector<8x32xf32>
    %151 = vector.extract_strided_slice %14 {offsets = [32, 0], sizes = [8, 128], strides = [1, 1]} : vector<64x128xf32> to vector<8x128xf32>
    %cst_41 = arith.constant dense<0.000000e+00> : vector<8x128xf32>
    %152 = tpu.matmul %140, %15, %cst_41 {dimension_numbers = #tpu.dot_dimension_numbers<[1], [0], [0], [1], [0, 0, 1, 1], [], []>} : vector<8x32xf32>, vector<32x128xf32>, vector<8x128xf32> -> vector<8x128xf32>
    %153 = arith.addf %151, %152 : vector<8x128xf32>
    %154 = arith.negf %153 : vector<8x128xf32>
    %155 = math.exp %154 : vector<8x128xf32>
    %cst_42 = arith.constant 1.000000e+00 : f32
    %156 = vector.broadcast %cst_42 : f32 to vector<8x128xf32>
    %157 = arith.addf %156, %155 : vector<8x128xf32>
    %158 = arith.divf %156, %157 : vector<8x128xf32>
    %159 = math.tanh %153 : vector<8x128xf32>
    %160 = vector.extract_strided_slice %158 {offsets = [0, 32], sizes = [8, 32], strides = [1, 1]} : vector<8x128xf32> to vector<8x32xf32>
    %161 = arith.mulf %160, %143 : vector<8x32xf32>
    %162 = vector.extract_strided_slice %158 {offsets = [0, 0], sizes = [8, 32], strides = [1, 1]} : vector<8x128xf32> to vector<8x32xf32>
    %163 = vector.extract_strided_slice %159 {offsets = [0, 64], sizes = [8, 32], strides = [1, 1]} : vector<8x128xf32> to vector<8x32xf32>
    %164 = arith.mulf %162, %163 : vector<8x32xf32>
    %165 = arith.addf %161, %164 : vector<8x32xf32>
    %166 = vector.extract_strided_slice %158 {offsets = [0, 96], sizes = [8, 32], strides = [1, 1]} : vector<8x128xf32> to vector<8x32xf32>
    %167 = math.tanh %165 : vector<8x32xf32>
    %168 = arith.mulf %166, %167 : vector<8x32xf32>
    %c4_i32 = arith.constant 4 : i32
    %169 = vector.broadcast %c4_i32 : i32 to vector<8x1xi32>
    %170 = arith.cmpi sgt, %0, %169 : vector<8x1xi32>
    %171 = vector.shape_cast %170 : vector<8x1xi1> to vector<8x1xi1>
    %172 = vector.broadcast %171 : vector<8x1xi1> to vector<8x32xi1>
    %173 = arith.select %172, %168, %140 : vector<8x32xi1>, vector<8x32xf32>
    %174 = vector.shape_cast %170 : vector<8x1xi1> to vector<8x1xi1>
    %175 = vector.broadcast %174 : vector<8x1xi1> to vector<8x32xi1>
    %176 = arith.select %175, %165, %143 : vector<8x32xi1>, vector<8x32xf32>
    %cst_43 = arith.constant 0.000000e+00 : f32
    %177 = vector.shape_cast %170 : vector<8x1xi1> to vector<8x1xi1>
    %178 = vector.broadcast %177 : vector<8x1xi1> to vector<8x32xi1>
    %179 = vector.broadcast %cst_43 : f32 to vector<8x32xf32>
    %180 = arith.select %178, %168, %179 : vector<8x32xi1>, vector<8x32xf32>
    %c1_i32_44 = arith.constant 1 : i32
    %181 = arith.subi %1, %c1_i32_44 : i32
    %c4_i32_45 = arith.constant 4 : i32
    %182 = arith.cmpi eq, %181, %c4_i32_45 : i32
    %183 = arith.select %182, %180, %150 : vector<8x32xf32>
    %184 = vector.extract_strided_slice %14 {offsets = [40, 0], sizes = [8, 128], strides = [1, 1]} : vector<64x128xf32> to vector<8x128xf32>
    %cst_46 = arith.constant dense<0.000000e+00> : vector<8x128xf32>
    %185 = tpu.matmul %173, %15, %cst_46 {dimension_numbers = #tpu.dot_dimension_numbers<[1], [0], [0], [1], [0, 0, 1, 1], [], []>} : vector<8x32xf32>, vector<32x128xf32>, vector<8x128xf32> -> vector<8x128xf32>
    %186 = arith.addf %184, %185 : vector<8x128xf32>
    %187 = arith.negf %186 : vector<8x128xf32>
    %188 = math.exp %187 : vector<8x128xf32>
    %cst_47 = arith.constant 1.000000e+00 : f32
    %189 = vector.broadcast %cst_47 : f32 to vector<8x128xf32>
    %190 = arith.addf %189, %188 : vector<8x128xf32>
    %191 = arith.divf %189, %190 : vector<8x128xf32>
    %192 = math.tanh %186 : vector<8x128xf32>
    %193 = vector.extract_strided_slice %191 {offsets = [0, 32], sizes = [8, 32], strides = [1, 1]} : vector<8x128xf32> to vector<8x32xf32>
    %194 = arith.mulf %193, %176 : vector<8x32xf32>
    %195 = vector.extract_strided_slice %191 {offsets = [0, 0], sizes = [8, 32], strides = [1, 1]} : vector<8x128xf32> to vector<8x32xf32>
    %196 = vector.extract_strided_slice %192 {offsets = [0, 64], sizes = [8, 32], strides = [1, 1]} : vector<8x128xf32> to vector<8x32xf32>
    %197 = arith.mulf %195, %196 : vector<8x32xf32>
    %198 = arith.addf %194, %197 : vector<8x32xf32>
    %199 = vector.extract_strided_slice %191 {offsets = [0, 96], sizes = [8, 32], strides = [1, 1]} : vector<8x128xf32> to vector<8x32xf32>
    %200 = math.tanh %198 : vector<8x32xf32>
    %201 = arith.mulf %199, %200 : vector<8x32xf32>
    %c5_i32 = arith.constant 5 : i32
    %202 = vector.broadcast %c5_i32 : i32 to vector<8x1xi32>
    %203 = arith.cmpi sgt, %0, %202 : vector<8x1xi32>
    %204 = vector.shape_cast %203 : vector<8x1xi1> to vector<8x1xi1>
    %205 = vector.broadcast %204 : vector<8x1xi1> to vector<8x32xi1>
    %206 = arith.select %205, %201, %173 : vector<8x32xi1>, vector<8x32xf32>
    %207 = vector.shape_cast %203 : vector<8x1xi1> to vector<8x1xi1>
    %208 = vector.broadcast %207 : vector<8x1xi1> to vector<8x32xi1>
    %209 = arith.select %208, %198, %176 : vector<8x32xi1>, vector<8x32xf32>
    %cst_48 = arith.constant 0.000000e+00 : f32
    %210 = vector.shape_cast %203 : vector<8x1xi1> to vector<8x1xi1>
    %211 = vector.broadcast %210 : vector<8x1xi1> to vector<8x32xi1>
    %212 = vector.broadcast %cst_48 : f32 to vector<8x32xf32>
    %213 = arith.select %211, %201, %212 : vector<8x32xi1>, vector<8x32xf32>
    %c1_i32_49 = arith.constant 1 : i32
    %214 = arith.subi %1, %c1_i32_49 : i32
    %c5_i32_50 = arith.constant 5 : i32
    %215 = arith.cmpi eq, %214, %c5_i32_50 : i32
    %216 = arith.select %215, %213, %183 : vector<8x32xf32>
    %217 = vector.extract_strided_slice %14 {offsets = [48, 0], sizes = [8, 128], strides = [1, 1]} : vector<64x128xf32> to vector<8x128xf32>
    %cst_51 = arith.constant dense<0.000000e+00> : vector<8x128xf32>
    %218 = tpu.matmul %206, %15, %cst_51 {dimension_numbers = #tpu.dot_dimension_numbers<[1], [0], [0], [1], [0, 0, 1, 1], [], []>} : vector<8x32xf32>, vector<32x128xf32>, vector<8x128xf32> -> vector<8x128xf32>
    %219 = arith.addf %217, %218 : vector<8x128xf32>
    %220 = arith.negf %219 : vector<8x128xf32>
    %221 = math.exp %220 : vector<8x128xf32>
    %cst_52 = arith.constant 1.000000e+00 : f32
    %222 = vector.broadcast %cst_52 : f32 to vector<8x128xf32>
    %223 = arith.addf %222, %221 : vector<8x128xf32>
    %224 = arith.divf %222, %223 : vector<8x128xf32>
    %225 = math.tanh %219 : vector<8x128xf32>
    %226 = vector.extract_strided_slice %224 {offsets = [0, 32], sizes = [8, 32], strides = [1, 1]} : vector<8x128xf32> to vector<8x32xf32>
    %227 = arith.mulf %226, %209 : vector<8x32xf32>
    %228 = vector.extract_strided_slice %224 {offsets = [0, 0], sizes = [8, 32], strides = [1, 1]} : vector<8x128xf32> to vector<8x32xf32>
    %229 = vector.extract_strided_slice %225 {offsets = [0, 64], sizes = [8, 32], strides = [1, 1]} : vector<8x128xf32> to vector<8x32xf32>
    %230 = arith.mulf %228, %229 : vector<8x32xf32>
    %231 = arith.addf %227, %230 : vector<8x32xf32>
    %232 = vector.extract_strided_slice %224 {offsets = [0, 96], sizes = [8, 32], strides = [1, 1]} : vector<8x128xf32> to vector<8x32xf32>
    %233 = math.tanh %231 : vector<8x32xf32>
    %234 = arith.mulf %232, %233 : vector<8x32xf32>
    %c6_i32 = arith.constant 6 : i32
    %235 = vector.broadcast %c6_i32 : i32 to vector<8x1xi32>
    %236 = arith.cmpi sgt, %0, %235 : vector<8x1xi32>
    %237 = vector.shape_cast %236 : vector<8x1xi1> to vector<8x1xi1>
    %238 = vector.broadcast %237 : vector<8x1xi1> to vector<8x32xi1>
    %239 = arith.select %238, %234, %206 : vector<8x32xi1>, vector<8x32xf32>
    %240 = vector.shape_cast %236 : vector<8x1xi1> to vector<8x1xi1>
    %241 = vector.broadcast %240 : vector<8x1xi1> to vector<8x32xi1>
    %242 = arith.select %241, %231, %209 : vector<8x32xi1>, vector<8x32xf32>
    %cst_53 = arith.constant 0.000000e+00 : f32
    %243 = vector.shape_cast %236 : vector<8x1xi1> to vector<8x1xi1>
    %244 = vector.broadcast %243 : vector<8x1xi1> to vector<8x32xi1>
    %245 = vector.broadcast %cst_53 : f32 to vector<8x32xf32>
    %246 = arith.select %244, %234, %245 : vector<8x32xi1>, vector<8x32xf32>
    %c1_i32_54 = arith.constant 1 : i32
    %247 = arith.subi %1, %c1_i32_54 : i32
    %c6_i32_55 = arith.constant 6 : i32
    %248 = arith.cmpi eq, %247, %c6_i32_55 : i32
    %249 = arith.select %248, %246, %216 : vector<8x32xf32>
    %250 = vector.extract_strided_slice %14 {offsets = [56, 0], sizes = [8, 128], strides = [1, 1]} : vector<64x128xf32> to vector<8x128xf32>
    %cst_56 = arith.constant dense<0.000000e+00> : vector<8x128xf32>
    %251 = tpu.matmul %239, %15, %cst_56 {dimension_numbers = #tpu.dot_dimension_numbers<[1], [0], [0], [1], [0, 0, 1, 1], [], []>} : vector<8x32xf32>, vector<32x128xf32>, vector<8x128xf32> -> vector<8x128xf32>
    %252 = arith.addf %250, %251 : vector<8x128xf32>
    %253 = arith.negf %252 : vector<8x128xf32>
    %254 = math.exp %253 : vector<8x128xf32>
    %cst_57 = arith.constant 1.000000e+00 : f32
    %255 = vector.broadcast %cst_57 : f32 to vector<8x128xf32>
    %256 = arith.addf %255, %254 : vector<8x128xf32>
    %257 = arith.divf %255, %256 : vector<8x128xf32>
    %258 = math.tanh %252 : vector<8x128xf32>
    %259 = vector.extract_strided_slice %257 {offsets = [0, 32], sizes = [8, 32], strides = [1, 1]} : vector<8x128xf32> to vector<8x32xf32>
    %260 = arith.mulf %259, %242 : vector<8x32xf32>
    %261 = vector.extract_strided_slice %257 {offsets = [0, 0], sizes = [8, 32], strides = [1, 1]} : vector<8x128xf32> to vector<8x32xf32>
    %262 = vector.extract_strided_slice %258 {offsets = [0, 64], sizes = [8, 32], strides = [1, 1]} : vector<8x128xf32> to vector<8x32xf32>
    %263 = arith.mulf %261, %262 : vector<8x32xf32>
    %264 = arith.addf %260, %263 : vector<8x32xf32>
    %265 = vector.extract_strided_slice %257 {offsets = [0, 96], sizes = [8, 32], strides = [1, 1]} : vector<8x128xf32> to vector<8x32xf32>
    %266 = math.tanh %264 : vector<8x32xf32>
    %267 = arith.mulf %265, %266 : vector<8x32xf32>
    %c7_i32 = arith.constant 7 : i32
    %268 = vector.broadcast %c7_i32 : i32 to vector<8x1xi32>
    %269 = arith.cmpi sgt, %0, %268 : vector<8x1xi32>
    %270 = vector.shape_cast %269 : vector<8x1xi1> to vector<8x1xi1>
    %271 = vector.broadcast %270 : vector<8x1xi1> to vector<8x32xi1>
    %272 = arith.select %271, %267, %239 : vector<8x32xi1>, vector<8x32xf32>
    %273 = vector.shape_cast %269 : vector<8x1xi1> to vector<8x1xi1>
    %274 = vector.broadcast %273 : vector<8x1xi1> to vector<8x32xi1>
    %275 = arith.select %274, %264, %242 : vector<8x32xi1>, vector<8x32xf32>
    %cst_58 = arith.constant 0.000000e+00 : f32
    %276 = vector.shape_cast %269 : vector<8x1xi1> to vector<8x1xi1>
    %277 = vector.broadcast %276 : vector<8x1xi1> to vector<8x32xi1>
    %278 = vector.broadcast %cst_58 : f32 to vector<8x32xf32>
    %279 = arith.select %277, %267, %278 : vector<8x32xi1>, vector<8x32xf32>
    %c1_i32_59 = arith.constant 1 : i32
    %280 = arith.subi %1, %c1_i32_59 : i32
    %c7_i32_60 = arith.constant 7 : i32
    %281 = arith.cmpi eq, %280, %c7_i32_60 : i32
    %282 = arith.select %281, %279, %249 : vector<8x32xf32>
    %c0_61 = arith.constant 0 : index
    %c0_62 = arith.constant 0 : index
    %283 = vector.load %arg11[%c0_61, %c0_62] : memref<32x16xf32, #tpu.memory_space<vmem>>, vector<32x16xf32>
    %cst_63 = arith.constant dense<0.000000e+00> : vector<8x16xf32>
    %284 = tpu.matmul %282, %283, %cst_63 {dimension_numbers = #tpu.dot_dimension_numbers<[1], [0], [0], [1], [0, 0, 1, 1], [], []>} : vector<8x32xf32>, vector<32x16xf32>, vector<8x16xf32> -> vector<8x16xf32>
    %c0_64 = arith.constant 0 : index
    %c0_65 = arith.constant 0 : index
    %285 = vector.load %arg12[%c0_64, %c0_65] : memref<1x16xf32, #tpu.memory_space<vmem>>, vector<1x16xf32>
    %286 = vector.broadcast %285 : vector<1x16xf32> to vector<8x16xf32>
    %287 = arith.addf %284, %286 : vector<8x16xf32>
    %cst_66 = arith.constant 0.000000e+00 : f32
    %288 = vector.broadcast %cst_66 : f32 to vector<8x16xf32>
    %289 = arith.maximumf %287, %288 : vector<8x16xf32>
    %c0_67 = arith.constant 0 : index
    %c0_68 = arith.constant 0 : index
    %290 = vector.load %arg13[%c0_67, %c0_68] : memref<32x16xf32, #tpu.memory_space<vmem>>, vector<32x16xf32>
    %cst_69 = arith.constant dense<0.000000e+00> : vector<8x16xf32>
    %291 = tpu.matmul %272, %290, %cst_69 {dimension_numbers = #tpu.dot_dimension_numbers<[1], [0], [0], [1], [0, 0, 1, 1], [], []>} : vector<8x32xf32>, vector<32x16xf32>, vector<8x16xf32> -> vector<8x16xf32>
    %c0_70 = arith.constant 0 : index
    %c0_71 = arith.constant 0 : index
    %292 = vector.load %arg14[%c0_70, %c0_71] : memref<1x16xf32, #tpu.memory_space<vmem>>, vector<1x16xf32>
    %293 = vector.broadcast %292 : vector<1x16xf32> to vector<8x16xf32>
    %294 = arith.addf %291, %293 : vector<8x16xf32>
    %cst_72 = arith.constant 0.000000e+00 : f32
    %295 = vector.broadcast %cst_72 : f32 to vector<8x16xf32>
    %296 = arith.maximumf %294, %295 : vector<8x16xf32>
    %cst_73 = arith.constant dense<0.000000e+00> : vector<8x8xf32>
    %297 = tpu.matmul %296, %289, %cst_73 {dimension_numbers = #tpu.dot_dimension_numbers<[1], [1], [0], [0], [0, 0, 1, 0], [], []>} : vector<8x16xf32>, vector<8x16xf32>, vector<8x8xf32> -> vector<8x8xf32>
    %cst_74 = arith.constant 2.500000e-01 : f32
    %298 = vector.broadcast %cst_74 : f32 to vector<8x8xf32>
    %299 = arith.mulf %297, %298 : vector<8x8xf32>
    %c0_75 = arith.constant 0 : index
    %c0_76 = arith.constant 0 : index
    %300 = vector.load %arg5[%c0_75, %c0_76] : memref<8x8xf32, #tpu.memory_space<vmem>>, vector<8x8xf32>
    %cst_77 = arith.constant 5.000000e-01 : f32
    %301 = vector.broadcast %cst_77 : f32 to vector<8x8xf32>
    %302 = arith.cmpf ogt, %300, %301 : vector<8x8xf32>
    %cst_78 = arith.constant -1.000000e+09 : f32
    %303 = vector.broadcast %cst_78 : f32 to vector<8x8xf32>
    %304 = arith.select %302, %299, %303 : vector<8x8xi1>, vector<8x8xf32>
    %cst_79 = arith.constant dense<0xFF800000> : vector<8xf32>
    %305 = vector.multi_reduction <maximumf>, %304, %cst_79 [1] : vector<8x8xf32> to vector<8xf32>
    %306 = vector.shape_cast %305 : vector<8xf32> to vector<8x1xf32>
    %307 = vector.broadcast %306 : vector<8x1xf32> to vector<8x8xf32>
    %308 = arith.subf %304, %307 : vector<8x8xf32>
    %309 = math.exp %308 : vector<8x8xf32>
    %cst_80 = arith.constant dense<0.000000e+00> : vector<8xf32>
    %310 = vector.multi_reduction <add>, %309, %cst_80 [1] : vector<8x8xf32> to vector<8xf32>
    %311 = vector.shape_cast %310 : vector<8xf32> to vector<8x1xf32>
    %312 = vector.broadcast %311 : vector<8x1xf32> to vector<8x8xf32>
    %313 = arith.divf %309, %312 : vector<8x8xf32>
    %cst_81 = arith.constant dense<0.000000e+00> : vector<8x16xf32>
    %314 = tpu.matmul %313, %289, %cst_81 {dimension_numbers = #tpu.dot_dimension_numbers<[1], [0], [0], [1], [0, 0, 1, 1], [], []>} : vector<8x8xf32>, vector<8x16xf32>, vector<8x16xf32> -> vector<8x16xf32>
    %c0_82 = arith.constant 0 : index
    %c0_83 = arith.constant 0 : index
    %315 = vector.load %arg16[%c0_82, %c0_83] : memref<16x128xf32, #tpu.memory_space<vmem>>, vector<16x128xf32>
    %cst_84 = arith.constant dense<0.000000e+00> : vector<8x128xf32>
    %316 = tpu.matmul %314, %315, %cst_84 {dimension_numbers = #tpu.dot_dimension_numbers<[1], [0], [0], [1], [0, 0, 1, 1], [], []>} : vector<8x16xf32>, vector<16x128xf32>, vector<8x128xf32> -> vector<8x128xf32>
    %c0_85 = arith.constant 0 : index
    %c0_86 = arith.constant 0 : index
    %317 = vector.load %arg17[%c0_85, %c0_86] : memref<32x128xf32, #tpu.memory_space<vmem>>, vector<32x128xf32>
    %cst_87 = arith.constant dense<0.000000e+00> : vector<8x128xf32>
    %318 = tpu.matmul %272, %317, %cst_87 {dimension_numbers = #tpu.dot_dimension_numbers<[1], [0], [0], [1], [0, 0, 1, 1], [], []>} : vector<8x32xf32>, vector<32x128xf32>, vector<8x128xf32> -> vector<8x128xf32>
    %319 = arith.addf %316, %318 : vector<8x128xf32>
    %c0_88 = arith.constant 0 : index
    %c0_89 = arith.constant 0 : index
    %320 = vector.load %arg18[%c0_88, %c0_89] : memref<1x128xf32, #tpu.memory_space<vmem>>, vector<1x128xf32>
    %321 = vector.broadcast %320 : vector<1x128xf32> to vector<8x128xf32>
    %322 = arith.addf %319, %321 : vector<8x128xf32>
    %c0_90 = arith.constant 0 : index
    %c0_91 = arith.constant 0 : index
    %323 = vector.load %arg15[%c0_90, %c0_91] : memref<16x128xf32, #tpu.memory_space<vmem>>, vector<16x128xf32>
    %c0_92 = arith.constant 0 : index
    %c0_93 = arith.constant 0 : index
    %324 = vector.load %arg19[%c0_92, %c0_93] : memref<32x2xf32, #tpu.memory_space<vmem>>, vector<32x2xf32>
    %c0_94 = arith.constant 0 : index
    %c0_95 = arith.constant 0 : index
    %325 = vector.load %arg20[%c0_94, %c0_95] : memref<1x2xf32, #tpu.memory_space<vmem>>, vector<1x2xf32>
    %326 = vector.extract_strided_slice %9 {offsets = [56, 0], sizes = [8, 16], strides = [1, 1]} : vector<64x16xf32> to vector<8x16xf32>
    %cst_96 = arith.constant dense<0.000000e+00> : vector<8x128xf32>
    %327 = tpu.matmul %326, %323, %cst_96 {dimension_numbers = #tpu.dot_dimension_numbers<[1], [0], [0], [1], [0, 0, 1, 1], [], []>} : vector<8x16xf32>, vector<16x128xf32>, vector<8x128xf32> -> vector<8x128xf32>
    %328 = arith.addf %327, %322 : vector<8x128xf32>
    %329 = arith.negf %328 : vector<8x128xf32>
    %330 = math.exp %329 : vector<8x128xf32>
    %cst_97 = arith.constant 1.000000e+00 : f32
    %331 = vector.broadcast %cst_97 : f32 to vector<8x128xf32>
    %332 = arith.addf %331, %330 : vector<8x128xf32>
    %333 = arith.divf %331, %332 : vector<8x128xf32>
    %334 = math.tanh %328 : vector<8x128xf32>
    %335 = vector.extract_strided_slice %333 {offsets = [0, 32], sizes = [8, 32], strides = [1, 1]} : vector<8x128xf32> to vector<8x32xf32>
    %336 = arith.mulf %335, %275 : vector<8x32xf32>
    %337 = vector.extract_strided_slice %333 {offsets = [0, 0], sizes = [8, 32], strides = [1, 1]} : vector<8x128xf32> to vector<8x32xf32>
    %338 = vector.extract_strided_slice %334 {offsets = [0, 64], sizes = [8, 32], strides = [1, 1]} : vector<8x128xf32> to vector<8x32xf32>
    %339 = arith.mulf %337, %338 : vector<8x32xf32>
    %340 = arith.addf %336, %339 : vector<8x32xf32>
    %341 = vector.extract_strided_slice %333 {offsets = [0, 96], sizes = [8, 32], strides = [1, 1]} : vector<8x128xf32> to vector<8x32xf32>
    %342 = math.tanh %340 : vector<8x32xf32>
    %343 = arith.mulf %341, %342 : vector<8x32xf32>
    %cst_98 = arith.constant dense<0.000000e+00> : vector<8x2xf32>
    %344 = tpu.matmul %343, %324, %cst_98 {dimension_numbers = #tpu.dot_dimension_numbers<[1], [0], [0], [1], [0, 0, 1, 1], [], []>} : vector<8x32xf32>, vector<32x2xf32>, vector<8x2xf32> -> vector<8x2xf32>
    %345 = vector.broadcast %325 : vector<1x2xf32> to vector<8x2xf32>
    %346 = arith.addf %344, %345 : vector<8x2xf32>
    %cst_99 = arith.constant dense<0.000000e+00> : vector<8x16xf32>
    %347 = tpu.matmul %346, %2, %cst_99 {dimension_numbers = #tpu.dot_dimension_numbers<[1], [0], [0], [1], [0, 0, 1, 1], [], []>} : vector<8x2xf32>, vector<2x16xf32>, vector<8x16xf32> -> vector<8x16xf32>
    %348 = vector.broadcast %3 : vector<1x16xf32> to vector<8x16xf32>
    %349 = arith.addf %347, %348 : vector<8x16xf32>
    %cst_100 = arith.constant 0.000000e+00 : f32
    %350 = vector.broadcast %cst_100 : f32 to vector<8x16xf32>
    %351 = arith.maximumf %349, %350 : vector<8x16xf32>
    %cst_101 = arith.constant dense<0.000000e+00> : vector<8x128xf32>
    %352 = tpu.matmul %351, %323, %cst_101 {dimension_numbers = #tpu.dot_dimension_numbers<[1], [0], [0], [1], [0, 0, 1, 1], [], []>} : vector<8x16xf32>, vector<16x128xf32>, vector<8x128xf32> -> vector<8x128xf32>
    %353 = arith.addf %352, %322 : vector<8x128xf32>
    %354 = arith.negf %353 : vector<8x128xf32>
    %355 = math.exp %354 : vector<8x128xf32>
    %cst_102 = arith.constant 1.000000e+00 : f32
    %356 = vector.broadcast %cst_102 : f32 to vector<8x128xf32>
    %357 = arith.addf %356, %355 : vector<8x128xf32>
    %358 = arith.divf %356, %357 : vector<8x128xf32>
    %359 = math.tanh %353 : vector<8x128xf32>
    %360 = vector.extract_strided_slice %358 {offsets = [0, 32], sizes = [8, 32], strides = [1, 1]} : vector<8x128xf32> to vector<8x32xf32>
    %361 = arith.mulf %360, %275 : vector<8x32xf32>
    %362 = vector.extract_strided_slice %358 {offsets = [0, 0], sizes = [8, 32], strides = [1, 1]} : vector<8x128xf32> to vector<8x32xf32>
    %363 = vector.extract_strided_slice %359 {offsets = [0, 64], sizes = [8, 32], strides = [1, 1]} : vector<8x128xf32> to vector<8x32xf32>
    %364 = arith.mulf %362, %363 : vector<8x32xf32>
    %365 = arith.addf %361, %364 : vector<8x32xf32>
    %366 = vector.extract_strided_slice %358 {offsets = [0, 96], sizes = [8, 32], strides = [1, 1]} : vector<8x128xf32> to vector<8x32xf32>
    %367 = math.tanh %365 : vector<8x32xf32>
    %368 = arith.mulf %366, %367 : vector<8x32xf32>
    %cst_103 = arith.constant dense<0.000000e+00> : vector<8x2xf32>
    %369 = tpu.matmul %368, %324, %cst_103 {dimension_numbers = #tpu.dot_dimension_numbers<[1], [0], [0], [1], [0, 0, 1, 1], [], []>} : vector<8x32xf32>, vector<32x2xf32>, vector<8x2xf32> -> vector<8x2xf32>
    %370 = vector.broadcast %325 : vector<1x2xf32> to vector<8x2xf32>
    %371 = arith.addf %369, %370 : vector<8x2xf32>
    %cst_104 = arith.constant dense<0.000000e+00> : vector<8x16xf32>
    %372 = tpu.matmul %371, %2, %cst_104 {dimension_numbers = #tpu.dot_dimension_numbers<[1], [0], [0], [1], [0, 0, 1, 1], [], []>} : vector<8x2xf32>, vector<2x16xf32>, vector<8x16xf32> -> vector<8x16xf32>
    %373 = vector.broadcast %3 : vector<1x16xf32> to vector<8x16xf32>
    %374 = arith.addf %372, %373 : vector<8x16xf32>
    %cst_105 = arith.constant 0.000000e+00 : f32
    %375 = vector.broadcast %cst_105 : f32 to vector<8x16xf32>
    %376 = arith.maximumf %374, %375 : vector<8x16xf32>
    %cst_106 = arith.constant dense<0.000000e+00> : vector<8x128xf32>
    %377 = tpu.matmul %376, %323, %cst_106 {dimension_numbers = #tpu.dot_dimension_numbers<[1], [0], [0], [1], [0, 0, 1, 1], [], []>} : vector<8x16xf32>, vector<16x128xf32>, vector<8x128xf32> -> vector<8x128xf32>
    %378 = arith.addf %377, %322 : vector<8x128xf32>
    %379 = arith.negf %378 : vector<8x128xf32>
    %380 = math.exp %379 : vector<8x128xf32>
    %cst_107 = arith.constant 1.000000e+00 : f32
    %381 = vector.broadcast %cst_107 : f32 to vector<8x128xf32>
    %382 = arith.addf %381, %380 : vector<8x128xf32>
    %383 = arith.divf %381, %382 : vector<8x128xf32>
    %384 = math.tanh %378 : vector<8x128xf32>
    %385 = vector.extract_strided_slice %383 {offsets = [0, 32], sizes = [8, 32], strides = [1, 1]} : vector<8x128xf32> to vector<8x32xf32>
    %386 = arith.mulf %385, %275 : vector<8x32xf32>
    %387 = vector.extract_strided_slice %383 {offsets = [0, 0], sizes = [8, 32], strides = [1, 1]} : vector<8x128xf32> to vector<8x32xf32>
    %388 = vector.extract_strided_slice %384 {offsets = [0, 64], sizes = [8, 32], strides = [1, 1]} : vector<8x128xf32> to vector<8x32xf32>
    %389 = arith.mulf %387, %388 : vector<8x32xf32>
    %390 = arith.addf %386, %389 : vector<8x32xf32>
    %391 = vector.extract_strided_slice %383 {offsets = [0, 96], sizes = [8, 32], strides = [1, 1]} : vector<8x128xf32> to vector<8x32xf32>
    %392 = math.tanh %390 : vector<8x32xf32>
    %393 = arith.mulf %391, %392 : vector<8x32xf32>
    %cst_108 = arith.constant dense<0.000000e+00> : vector<8x2xf32>
    %394 = tpu.matmul %393, %324, %cst_108 {dimension_numbers = #tpu.dot_dimension_numbers<[1], [0], [0], [1], [0, 0, 1, 1], [], []>} : vector<8x32xf32>, vector<32x2xf32>, vector<8x2xf32> -> vector<8x2xf32>
    %395 = vector.broadcast %325 : vector<1x2xf32> to vector<8x2xf32>
    %396 = arith.addf %394, %395 : vector<8x2xf32>
    %cst_109 = arith.constant dense<0.000000e+00> : vector<8x16xf32>
    %397 = tpu.matmul %396, %2, %cst_109 {dimension_numbers = #tpu.dot_dimension_numbers<[1], [0], [0], [1], [0, 0, 1, 1], [], []>} : vector<8x2xf32>, vector<2x16xf32>, vector<8x16xf32> -> vector<8x16xf32>
    %398 = vector.broadcast %3 : vector<1x16xf32> to vector<8x16xf32>
    %399 = arith.addf %397, %398 : vector<8x16xf32>
    %cst_110 = arith.constant 0.000000e+00 : f32
    %400 = vector.broadcast %cst_110 : f32 to vector<8x16xf32>
    %401 = arith.maximumf %399, %400 : vector<8x16xf32>
    %cst_111 = arith.constant dense<0.000000e+00> : vector<8x128xf32>
    %402 = tpu.matmul %401, %323, %cst_111 {dimension_numbers = #tpu.dot_dimension_numbers<[1], [0], [0], [1], [0, 0, 1, 1], [], []>} : vector<8x16xf32>, vector<16x128xf32>, vector<8x128xf32> -> vector<8x128xf32>
    %403 = arith.addf %402, %322 : vector<8x128xf32>
    %404 = arith.negf %403 : vector<8x128xf32>
    %405 = math.exp %404 : vector<8x128xf32>
    %cst_112 = arith.constant 1.000000e+00 : f32
    %406 = vector.broadcast %cst_112 : f32 to vector<8x128xf32>
    %407 = arith.addf %406, %405 : vector<8x128xf32>
    %408 = arith.divf %406, %407 : vector<8x128xf32>
    %409 = math.tanh %403 : vector<8x128xf32>
    %410 = vector.extract_strided_slice %408 {offsets = [0, 32], sizes = [8, 32], strides = [1, 1]} : vector<8x128xf32> to vector<8x32xf32>
    %411 = arith.mulf %410, %275 : vector<8x32xf32>
    %412 = vector.extract_strided_slice %408 {offsets = [0, 0], sizes = [8, 32], strides = [1, 1]} : vector<8x128xf32> to vector<8x32xf32>
    %413 = vector.extract_strided_slice %409 {offsets = [0, 64], sizes = [8, 32], strides = [1, 1]} : vector<8x128xf32> to vector<8x32xf32>
    %414 = arith.mulf %412, %413 : vector<8x32xf32>
    %415 = arith.addf %411, %414 : vector<8x32xf32>
    %416 = vector.extract_strided_slice %408 {offsets = [0, 96], sizes = [8, 32], strides = [1, 1]} : vector<8x128xf32> to vector<8x32xf32>
    %417 = math.tanh %415 : vector<8x32xf32>
    %418 = arith.mulf %416, %417 : vector<8x32xf32>
    %cst_113 = arith.constant dense<0.000000e+00> : vector<8x2xf32>
    %419 = tpu.matmul %418, %324, %cst_113 {dimension_numbers = #tpu.dot_dimension_numbers<[1], [0], [0], [1], [0, 0, 1, 1], [], []>} : vector<8x32xf32>, vector<32x2xf32>, vector<8x2xf32> -> vector<8x2xf32>
    %420 = vector.broadcast %325 : vector<1x2xf32> to vector<8x2xf32>
    %421 = arith.addf %419, %420 : vector<8x2xf32>
    %422 = tpu.concatenate %346, %371, %396, %421 in 1 : vector<8x2xf32>, vector<8x2xf32>, vector<8x2xf32>, vector<8x2xf32> -> vector<8x8xf32>
    %c0_114 = arith.constant 0 : index
    %c0_115 = arith.constant 0 : index
    %423 = vector.load %arg21[%c0_114, %c0_115] : memref<8x8xf32, #tpu.memory_space<vmem>>, vector<8x8xf32>
    tpu.vector_store %arg21[%c0_114, %c0_115], %422 {strides = array<i32>} : memref<8x8xf32, #tpu.memory_space<vmem>>, vector<8x8xf32>,
    return
  }
}

</mosaic_0001>

<bundles_post_ra>
// kernel: tpu_custom_call.1
= control target key start
LH: loop header
LB: loop body
LE: loop exit
PB: predicated region body
PF: predicated region fallthrough
CT: control target
= control target key end

     0   :  { %s2342_s0 = inlined_call_operand.vmem [shape: f32[64,2], index: 0, kind: input, shape index: {}]   ;;  %s2343_s1 = inlined_call_operand.vmem [shape: s32[8,1], index: 1, kind: input, shape index: {}]   ;;  %s2344_s2 = inlined_call_operand.<no memory space> [shape: s32[1], index: 2, kind: input, shape index: {}]   ;;  %s2345_s3 = inlined_call_operand.vmem [shape: f32[8,32], index: 3, kind: input, shape index: {}]   ;;  %s2346_s4 = inlined_call_operand.vmem [shape: f32[8,32], index: 4, kind: input, shape index: {}]   ;;  %s2347_s5 = inlined_call_operand.vmem [shape: f32[8,8], index: 5, kind: input, shape index: {}]   ;;  %s2348_s6 = inlined_call_operand.vmem [shape: f32[2,16], index: 6, kind: input, shape index: {}]   ;;  %s2349_s7 = inlined_call_operand.vmem [shape: f32[1,16], index: 7, kind: input, shape index: {}]   ;;  %s2350_s8 = inlined_call_operand.vmem [shape: f32[16,128], index: 8, kind: input, shape index: {}]   ;;  %s2351_s9 = inlined_call_operand.vmem [shape: f32[32,128], index: 9, kind: input, shape index: {}]   ;;  %s2352_s10 = inlined_call_operand.vmem [shape: f32[1,128], index: 10, kind: input, shape index: {}]   ;;  %s2353_s11 = inlined_call_operand.vmem [shape: f32[32,16], index: 11, kind: input, shape index: {}]   ;;  %s2354_s12 = inlined_call_operand.vmem [shape: f32[1,16], index: 12, kind: input, shape index: {}]   ;;  %s2355_s13 = inlined_call_operand.vmem [shape: f32[32,16], index: 13, kind: input, shape index: {}]   ;;  %s2356_s14 = inlined_call_operand.vmem [shape: f32[1,16], index: 14, kind: input, shape index: {}]   ;;  %s2357_s15 = inlined_call_operand.vmem [shape: f32[16,128], index: 15, kind: input, shape index: {}]   ;;  %s2358_s16 = inlined_call_operand.vmem [shape: f32[16,128], index: 16, kind: input, shape index: {}]   ;;  %s2359_s17 = inlined_call_operand.vmem [shape: f32[32,128], index: 17, kind: input, shape index: {}]   ;;  %s2360_s18 = inlined_call_operand.vmem [shape: f32[1,128], index: 18, kind: input, shape index: {}]   ;;  %s2361_s19 = inlined_call_operand.vmem [shape: f32[32,2], index: 19, kind: input, shape index: {}]   ;;  %s2362_s20 = inlined_call_operand.vmem [shape: f32[1,2], index: 20, kind: input, shape index: {}]   ;;  %s2363_s21 = inlined_call_operand.hbm [shape: f32[8,8], index: 21, kind: output, shape index: {}]  }
   0x1   :  { %2365 = sst [smem:[#allocation6_spill]] %s2342_s0 }
   0x2   :  { %2366 = sst [smem:[#allocation7_spill]] %s2343_s1 }
   0x3   :  { %2367 = sst [smem:[#allocation8_spill]] %s2344_s2 }
   0x4   :  { %2368 = sst [smem:[#allocation9_spill]] %s2345_s3 }
   0x5   :  { %2369 = sst [smem:[#allocation10_spill]] %s2346_s4 }
   0x6   :  { %2370 = sst [smem:[#allocation11_spill]] %s2347_s5 }
   0x7   :  { %v72_v0 = vld [vmem:[%s2348_s6] sm:$0x3]  ;;  %vm110_vm0 = vcmask 1041408   ;;  %s2371_s3 = sld [smem:[#allocation6_spill]]  ;;  %vm85_vm1 = vcmask 15360   ;;  %v1846_v2 = vld [vmem:[%s2351_s9 + $0x18] sm:$0xff] }
   0x8   :  { %1515 = vmatpush.msk.msra.mxu0 %vm110_vm0, %v72_v0  ;;  %257 = vmatpush.msra.mxu2 %v1846_v2  ;;  %v1853_v3 = vld [vmem:[%s2351_s9 + $0x10] sm:$0xff]  ;;  %v1859_v4 = vld [vmem:[%s2351_s9 + $0x8] sm:$0xff] }
   0x9   :  { %342 = vmatpush.msra.mxu3 %v1846_v2 }
   0xa   :  { %258 = vmatpush.msra.mxu2 %v1853_v3  ;;  %1559 = vmatpush.msk.msrb.mxu0 %vm110_vm0, %v72_v0 }
   0xb   :  { %343 = vmatpush.msra.mxu3 %v1853_v3 }
   0xd   :  { %v74_v1 = vld [vmem:[%s2371_s3] sm:$0xff] }
   0xe   :  { %1516 = vmatmul.msk.f32.vlgmr.msra.gmra.mxu0 %vm85_vm1, %v74_v1 }
   0xf   :  { %27 = vsyncpa [#allocation4], 0  ;;  %259 = vmatpush.msra.mxu2 %v1859_v4  ;;  %344 = vmatpush.msra.mxu3 %v1859_v4  ;;  %v1870_v5 = vld [vmem:[%s2351_s9] sm:$0xff]  ;;  %s2372_s2 = sld [smem:[#allocation9_spill]]  ;;  %vm241_vm2 = vcmask 261120   ;;  %v164_v7 = vld [vmem:[%s2350_s8 + $0x8] sm:$0xff] }
  0x10   :  { %208 = vmatpush.msra.mxu1 %v164_v7  ;;  %v163_v8 = vld [vmem:[%s2350_s8] sm:$0xff]  ;;  %vm169_vm3 = vcmask 130048   ;;  %s1719_s4 = smov 64   ;;  %s2373_s22 = sld [smem:[#allocation10_spill]]  ;;  %v1721_v25 = vmov 0   ;;  %v75_v38 = vld [vmem:[%s2371_s3 + $0x8] sm:$0xff] }
  0x11   :  { %260 = vmatpush.msra.mxu2 %v1870_v5  ;;  %345 = vmatpush.msra.mxu3 %v1870_v5  ;;  %v1902_v9 = vld [vmem:[%s2349_s7] ss:$0 sm:$0xff]  ;;  %s1720_s23 = smov 32   ;;  %s2374_s24 = sld [smem:[#allocation7_spill]] }
  0x12   :  { %209 = vmatpush.msra.mxu1 %v163_v8  ;;  %v1909_v13 = vld [vmem:[%s2352_s10] ss:$0 sm:$0xff]  ;;  %1582 = vset.pattern.permute.xlu2 %v1721_v25  ;;  %s2375_s29 = sld [smem:[#allocation8_spill]]  ;;  %s1725_s8 = smov 6  }
  0x13   :  { %496 = vmatpush.msrb.mxu3 %v1846_v2  ;;  %419 = vmatpush.msrb.mxu2 %v1846_v2  ;;  %s1726_s28 = smov [#allocation3]  }
  0x14   :  { %1583 = vset.pattern.permute.xlu1 %v1721_v25  ;;  %1584 = vset.pattern.permute.xlu0 %v1721_v25 }
  0x15   :  { %v1876_v6 = vld [vmem:[%s2372_s2] sm:$0xff]  ;;  %497 = vmatpush.msrb.mxu3 %v1853_v3  ;;  %420 = vmatpush.msrb.mxu2 %v1853_v3  ;;  %s1722_s2 = smov 96  }
  0x16   :  { %1532 = vmatmul.msk.f32.vlgmr.msra.gmra.mxu2 %vm241_vm2, %v1876_v6  ;;  %v240_v19 = vld [vmem:[%s2373_s22] sm:$0xff]  ;;  %1517 = vmatmul.msk.f32.gmra.mxu0 %vm85_vm1, %v75_v38 }
  0x17   :  { %498 = vmatpush.msrb.mxu3 %v1859_v4  ;;  %421 = vmatpush.msrb.mxu2 %v1859_v4  ;;  %v1920_v23 = vld [vmem:[%s2374_s24] sm:$0xff] }
  0x18   :  { %vm307_vm4 = vcmp.gt.s32.totalorder %v1920_v23, 0  ;;  %vm388_vm10 = vcmp.gt.s32.totalorder %v1920_v23, 1  ;;  %s1976_s0 = sadd.s32 4294967295, %s2375_s29 }
  0x19   :  { %499 = vmatpush.msrb.mxu3 %v1870_v5  ;;  %422 = vmatpush.msrb.mxu2 %v1870_v5  ;;  %v308_v26 = vsel %vm307_vm4, 1, %v1721_v25  ;;  %v389_v58 = vsel %vm388_vm10, 1, %v1721_v25  ;;  %p320_p0 = scmp.eq.s32.totalorder %s1976_s0, 0  ;;  %p397_p1 = scmp.eq.s32.totalorder %s1976_s0, 1 }
  0x1a   :  { %310 = vperm.xlu2 %1582, %v308_v26   ;;  %p474_p2 = scmp.eq.s32.totalorder %s1976_s0, 2  ;;  %p551_p3 = scmp.eq.s32.totalorder %s1976_s0, 3 }
  0x1b   :  { %573 = vmatpush.msra.mxu2 %v1846_v2  ;;  %s321_s30 = scalar_select %p320_p0, 1, 0 }
  0x1c   :  { %s398_s5 = scalar_select %p397_p1, 1, 0 }
  0x1d   :  { %574 = vmatpush.msra.mxu2 %v1853_v3  ;;  %s475_s1 = scalar_select %p474_p2, 1, 0 }
  0x1e   :  { %s552_s25 = scalar_select %p551_p3, 1, 0 }
  0x1f   :  { %575 = vmatpush.msra.mxu2 %v1859_v4  ;;  %p628_p4 = scmp.eq.s32.totalorder %s1976_s0, 4  ;;  %p705_p5 = scmp.eq.s32.totalorder %s1976_s0, 5 }
  0x20   :  { %p782_p6 = scmp.eq.s32.totalorder %s1976_s0, 6  ;;  %p859_p7 = scmp.eq.s32.totalorder %s1976_s0, 7 }
  0x21   :  { %576 = vmatpush.msra.mxu2 %v1870_v5  ;;  %s629_s27 = scalar_select %p628_p4, 1, 0 }
  0x22   :  { %313 = vrot.lane.b32.xlu2 %v1876_v6, %s1722_s2  ;;  %s706_s29 = scalar_select %p705_p5, 1, 0 }
  0x23   :  { %s783_s22 = scalar_select %p782_p6, 1, 0 }
  0x74   :  { %v1936_v47 = vpop.permute.xlu2 %310 }
  0x75   :  { %vm312_vm9 = vcmp.eq.s32.totalorder %v1936_v47, 1 }
  0x7c   :  { %v314_v49 = vpop.permute.xlu2 %313 }
  0x8b   :  { %v131_v10 = vpop.f32.mrf.mxu0 }
  0x8c   :  { %v132_v11 = vadd.f32 %v1902_v9, %v131_v10 }
  0x8e   :  { %v155_v12 = vmax.f32 %v132_v11, 0.0 }
  0x90   :  { %1524 = vmatmul.msk.f32.vlgmr.msra.gmra.mxu1 %vm169_vm3, %v155_v12 }
  0x93   :  { %v134_v44 = vpop.f32.mrf.mxu0 }
  0x94   :  { %v135_v45 = vadd.f32 %v1902_v9, %v134_v44 }
  0x96   :  { %v156_v46 = vmax.f32 %v135_v45, 0.0 }
  0x98   :  { %1525 = vmatmul.msk.f32.gmra.mxu1 %vm169_vm3, %v156_v46 }
  0x99   :  { %v262_v15 = vpop.f32.mrf.mxu2 }
 0x10d   :  { %v211_v14 = vpop.f32.mrf.mxu1 }
 0x10e   :  { %v212_v16 = vadd.f32 %v1909_v13, %v211_v14 }
 0x110   :  { %v265_v17 = vadd.f32 %v262_v15, %v212_v16  ;;  %v76_v16 = vld [vmem:[%s2371_s3 + $0x10] sm:$0xff] }
 0x111   :  { %1518 = vmatmul.msk.f32.gmra.mxu0 %vm85_vm1, %v76_v16 }
 0x112   :  { %1591 = vtanh.f32 %v265_v17  ;;  %v1533_v20 = vmul.f32 -1.442695, %v265_v17 }
 0x114   :  { %1593 = vpow2.f32 %v1533_v20 }
 0x115   :  { %v214_v53 = vpop.f32.mrf.mxu1 }
 0x116   :  { %v215_v54 = vadd.f32 %v1909_v13, %v214_v53 }
 0x118   :  { %v1592_v18 = vpop.eup %1591 }
 0x119   :  { %292 = vrot.lane.b32.xlu0 %v1592_v18, %s1719_s4 }
 0x11a   :  { %v1594_v21 = vpop.eup %1593 }
 0x11b   :  { %v269_v22 = vadd.f32 1.0, %v1594_v21 }
 0x11d   :  { %1595 = vrcp.f32 %v269_v22  ;;  %v281_v31 = vand.u32 2147483648, %v269_v22  ;;  %vm275_vm6 = vweird.f32 %v269_v22  ;;  %v279_v32 = vand.u32 2147483647, %v269_v22 }
 0x11f   :  { %v282_v34 = vor.u32 1.1754944e-38, %v281_v31  ;;  %vm280_vm8 = vcmp.eq.f32.partialorder %v279_v32, 8.507059e+37 }
 0x121   :  { %287 = vrot.lane.b32.xlu0 %v240_v19, %s1720_s23 }
 0x123   :  { %v1596_v24 = vpop.eup %1595 }
 0x124   :  { %v271_v27 = vmul.f32 %v1596_v24, %v269_v22  ;;  %vm276_vm5 = vweird.f32 %v1596_v24 }
 0x125   :  { %vm277_vm7 = vmor %vm275_vm6, %vm276_vm5  ;;  %vm465_vm6 = vcmp.gt.s32.totalorder %v1920_v23, 2 }
 0x126   :  { %v272_v28 = vsub.f32 1.0, %v271_v27  ;;  %v322_v27 = vstv %s321_s30  ;;  %v466_v46 = vsel %vm465_vm6, 1, %v1721_v25 }
 0x127   :  { %vm323_vm15 = vcmp.eq.s32.totalorder %v322_v27, 1 }
 0x128   :  { %v273_v29 = vmul.f32 %v1596_v24, %v272_v28  ;;  %v399_v28 = vstv %s398_s5  ;;  %s1506_s5 = sshll.u32 %s2363_s21, 4  ;;  %s1507_s5 = int_to_ptr.hbm [resolvable:$true] %s1506_s5 }
 0x129   :  { %vm400_vm4 = vcmp.eq.s32.totalorder %v399_v28, 1 }
 0x12a   :  { %v274_v30 = vadd.f32 %v1596_v24, %v273_v29 }
 0x12c   :  { %v278_v33 = vsel %vm277_vm7, %v1596_v24, %v274_v30  ;;  %vm542_vm7 = vcmp.gt.s32.totalorder %v1920_v23, 3 }
 0x12d   :  { %v283_v36 = vsel %vm280_vm8, %v282_v34, %v278_v33  ;;  %v543_v47 = vsel %vm542_vm7, 1, %v1721_v25 }
 0x18b   :  { %v293_v35 = vpop.permute.xlu0 %292 }
 0x18c   :  { %v295_v37 = vmul.f32 %v293_v35, %v283_v36 }
 0x18e   :  { %297 = vrot.lane.b32.xlu1 %v295_v37, %s1720_s23  ;;  %v137_v22 = vpop.f32.mrf.mxu0 }
 0x18f   :  { %v138_v24 = vadd.f32 %v1902_v9, %v137_v22 }
 0x191   :  { %v157_v26 = vmax.f32 %v138_v24, 0.0 }
 0x193   :  { %v288_v39 = vpop.permute.xlu0 %287  ;;  %1526 = vmatmul.msk.f32.gmra.mxu1 %vm169_vm3, %v157_v26 }
 0x194   :  { %v290_v40 = vmul.f32 %v288_v39, %v283_v36 }
 0x200   :  { %v298_v41 = vpop.permute.xlu1 %297 }
 0x201   :  { %v300_v42 = vadd.f32 %v298_v41, %v290_v40 }
 0x203   :  { %1597 = vtanh.f32 %v300_v42  ;;  %v1964_v17 = vsel %vm312_vm9, %v300_v42, %v288_v39 }
 0x209   :  { %v1598_v43 = vpop.eup %1597 }
 0x20a   :  { %303 = vrot.lane.b32.xlu1 %v1598_v43, %s1719_s4 }
 0x210   :  { %v217_v38 = vpop.f32.mrf.mxu1 }
 0x211   :  { %v218_v39 = vadd.f32 %v1909_v13, %v217_v38  ;;  %v78_v38 = vld [vmem:[%s2371_s3 + $0x20] sm:$0xff] }
 0x27c   :  { %v304_v48 = vpop.permute.xlu1 %303 }
 0x27d   :  { %v1938_v50 = vmul.f32 %v304_v48, %v283_v36 }
 0x27f   :  { %v1944_v51 = vsel %vm312_vm9, %v1938_v50, %v314_v49  ;;  %v318_v30 = vsel %vm312_vm9, %v1938_v50, 0.0 }
 0x280   :  { %326 = vrot.lane.b32.xlu0 %v1944_v51, %s1720_s23  ;;  %v324_v33 = vsel %vm323_vm15, %v318_v30, 0.0 }
 0x2f2   :  { %v327_v52 = vpop.permute.xlu0 %326 }
 0x2f3   :  { %1535 = vmatmul.msk.f32.vlgmr.msra.gmra.mxu3 %vm241_vm2, %v327_v52 }
 0x2f4   :  { %650 = vmatpush.msra.mxu3 %v1846_v2 }
 0x2f6   :  { %651 = vmatpush.msra.mxu3 %v1853_v3 }
 0x2f8   :  { %652 = vmatpush.msra.mxu3 %v1859_v4 }
 0x2fa   :  { %653 = vmatpush.msra.mxu3 %v1870_v5 }
 0x376   :  { %v347_v55 = vpop.f32.mrf.mxu3 }
 0x377   :  { %v350_v56 = vadd.f32 %v347_v55, %v215_v54 }
 0x379   :  { %1599 = vtanh.f32 %v350_v56  ;;  %v1536_v59 = vmul.f32 -1.442695, %v350_v56 }
 0x37b   :  { %1601 = vpow2.f32 %v1536_v59 }
 0x37f   :  { %v1600_v57 = vpop.eup %1599 }
 0x380   :  { %373 = vrot.lane.b32.xlu1 %v1600_v57, %s1719_s4 }
 0x381   :  { %v1602_v60 = vpop.eup %1601 }
 0x382   :  { %v354_v61 = vadd.f32 1.0, %v1602_v60  ;;  %v77_v60 = vld [vmem:[%s2371_s3 + $0x18] sm:$0xff] }
 0x383   :  { %1519 = vmatmul.msk.f32.gmra.mxu0 %vm85_vm1, %v77_v60 }
 0x384   :  { %1603 = vrcp.f32 %v354_v61  ;;  %v366_v7 = vand.u32 2147483648, %v354_v61  ;;  %vm360_vm12 = vweird.f32 %v354_v61  ;;  %v364_v8 = vand.u32 2147483647, %v354_v61 }
 0x386   :  { %v367_v11 = vor.u32 1.1754944e-38, %v366_v7  ;;  %vm365_vm14 = vcmp.eq.f32.partialorder %v364_v8, 8.507059e+37 }
 0x388   :  { %391 = vperm.xlu1 %1583, %v389_v58  }
 0x38a   :  { %v1604_v62 = vpop.eup %1603 }
 0x38b   :  { %v356_v63 = vmul.f32 %v1604_v62, %v354_v61  ;;  %vm361_vm11 = vweird.f32 %v1604_v62  ;;  %1520 = vmatmul.msk.f32.gmra.mxu0 %vm85_vm1, %v78_v38 }
 0x38c   :  { %vm362_vm13 = vmor %vm360_vm12, %vm361_vm11 }
 0x38d   :  { %v357_v0 = vsub.f32 1.0, %v356_v63 }
 0x38f   :  { %v358_v1 = vmul.f32 %v1604_v62, %v357_v0 }
 0x391   :  { %v359_v6 = vadd.f32 %v1604_v62, %v358_v1 }
 0x393   :  { %v363_v10 = vsel %vm362_vm13, %v1604_v62, %v359_v6  ;;  %v476_v6 = vstv %s475_s1 }
 0x394   :  { %v368_v14 = vsel %vm365_vm14, %v367_v11, %v363_v10  ;;  %vm2013_vm12 = vcmp.eq.s32.totalorder %v476_v6, 1 }
 0x395   :  { %v371_v18 = vmul.f32 %v368_v14, %v1964_v17 }
 0x3f2   :  { %v374_v12 = vpop.permute.xlu1 %373 }
 0x3f3   :  { %v376_v15 = vmul.f32 %v374_v12, %v368_v14 }
 0x3f5   :  { %378 = vrot.lane.b32.xlu2 %v376_v15, %s1720_s23 }
 0x3fa   :  { %v392_v29 = vpop.permute.xlu1 %391 }
 0x3fb   :  { %vm393_vm5 = vcmp.eq.s32.totalorder %v392_v29, 1 }
 0x400   :  { %v140_v16 = vpop.f32.mrf.mxu0 }
 0x44f   :  { %v379_v19 = vpop.permute.xlu2 %378 }
 0x450   :  { %v1967_v20 = vadd.f32 %v379_v19, %v371_v18 }
 0x452   :  { %1605 = vtanh.f32 %v1967_v20  ;;  %v395_v61 = vsel %vm393_vm5, %v1967_v20, %v1964_v17  ;;  %v141_v17 = vadd.f32 %v1902_v9, %v140_v16 }
 0x454   :  { %v158_v18 = vmax.f32 %v141_v17, 0.0 }
 0x456   :  { %1527 = vmatmul.msk.f32.gmra.mxu1 %vm169_vm3, %v158_v18  ;;  %v79_v18 = vld [vmem:[%s2371_s3 + $0x28] sm:$0xff] }
 0x457   :  { %1521 = vmatmul.msk.f32.gmra.mxu0 %vm85_vm1, %v79_v18 }
 0x458   :  { %v1606_v21 = vpop.eup %1605 }
 0x459   :  { %384 = vrot.lane.b32.xlu0 %v1606_v21, %s1719_s4 }
 0x4cb   :  { %v385_v31 = vpop.permute.xlu0 %384 }
 0x4cc   :  { %v387_v32 = vmul.f32 %v385_v31, %v368_v14 }
 0x4ce   :  { %v396_v34 = vsel %vm393_vm5, %v387_v32, 0.0  ;;  %v1986_v35 = vsel %vm393_vm5, %v387_v32, %v1944_v51 }
 0x4cf   :  { %v1988_v36 = vsel %vm400_vm4, %v396_v34, %v324_v33  ;;  %403 = vrot.lane.b32.xlu2 %v1986_v35, %s1720_s23 }
 0x4d3   :  { %v220_v20 = vpop.f32.mrf.mxu1 }
 0x4d4   :  { %v221_v21 = vadd.f32 %v1909_v13, %v220_v20 }
 0x529   :  { %v404_v37 = vpop.permute.xlu2 %403 }
 0x52a   :  { %1537 = vmatmul.msk.f32.vlgmr.msrb.gmra.mxu2 %vm241_vm2, %v404_v37 }
 0x52b   :  { %727 = vmatpush.msrb.mxu2 %v1846_v2 }
 0x52d   :  { %728 = vmatpush.msrb.mxu2 %v1853_v3 }
 0x52f   :  { %729 = vmatpush.msrb.mxu2 %v1859_v4 }
 0x531   :  { %730 = vmatpush.msrb.mxu2 %v1870_v5 }
 0x5ad   :  { %v424_v40 = vpop.f32.mrf.mxu2 }
 0x5ae   :  { %v427_v41 = vadd.f32 %v424_v40, %v218_v39 }
 0x5b0   :  { %1607 = vtanh.f32 %v427_v41  ;;  %v1538_v43 = vmul.f32 -1.442695, %v427_v41 }
 0x5b2   :  { %1609 = vpow2.f32 %v1538_v43 }
 0x5b6   :  { %v1608_v42 = vpop.eup %1607 }
 0x5b7   :  { %450 = vrot.lane.b32.xlu0 %v1608_v42, %s1719_s4 }
 0x5b8   :  { %v1610_v44 = vpop.eup %1609 }
 0x5b9   :  { %v431_v45 = vadd.f32 1.0, %v1610_v44  ;;  %v553_v44 = vstv %s552_s25 }
 0x5ba   :  { %vm554_vm6 = vcmp.eq.s32.totalorder %v553_v44, 1 }
 0x5bb   :  { %1611 = vrcp.f32 %v431_v45  ;;  %v443_v53 = vand.u32 2147483648, %v431_v45  ;;  %vm437_vm9 = vweird.f32 %v431_v45  ;;  %v441_v54 = vand.u32 2147483647, %v431_v45 }
 0x5bd   :  { %v444_v56 = vor.u32 1.1754944e-38, %v443_v53  ;;  %vm442_vm11 = vcmp.eq.f32.partialorder %v441_v54, 8.507059e+37 }
 0x5bf   :  { %468 = vperm.xlu0 %1584, %v466_v46  }
 0x5c1   :  { %v1612_v48 = vpop.eup %1611 }
 0x5c2   :  { %v433_v49 = vmul.f32 %v1612_v48, %v431_v45  ;;  %vm438_vm8 = vweird.f32 %v1612_v48 }
 0x5c3   :  { %vm439_vm10 = vmor %vm437_vm9, %vm438_vm8  ;;  %vm619_vm8 = vcmp.gt.s32.totalorder %v1920_v23, 4 }
 0x5c4   :  { %v434_v50 = vsub.f32 1.0, %v433_v49  ;;  %v620_v60 = vsel %vm619_vm8, 1, %v1721_v25 }
 0x5c6   :  { %v435_v51 = vmul.f32 %v1612_v48, %v434_v50 }
 0x5c7   :  { %545 = vperm.xlu0 %1584, %v543_v47  }
 0x5c8   :  { %v436_v52 = vadd.f32 %v1612_v48, %v435_v51  ;;  %v143_v51 = vpop.f32.mrf.mxu0 }
 0x5ca   :  { %v440_v55 = vsel %vm439_vm10, %v1612_v48, %v436_v52  ;;  %v144_v52 = vadd.f32 %v1902_v9, %v143_v51 }
 0x5cb   :  { %v445_v58 = vsel %vm442_vm11, %v444_v56, %v440_v55 }
 0x5cc   :  { %v448_v62 = vmul.f32 %v445_v58, %v395_v61  ;;  %v159_v53 = vmax.f32 %v144_v52, 0.0 }
 0x5ce   :  { %1528 = vmatmul.msk.f32.gmra.mxu1 %vm169_vm3, %v159_v53 }
 0x629   :  { %v451_v57 = vpop.permute.xlu0 %450 }
 0x62a   :  { %v453_v59 = vmul.f32 %v451_v57, %v445_v58 }
 0x62c   :  { %455 = vrot.lane.b32.xlu1 %v453_v59, %s1720_s23 }
 0x631   :  { %v469_v7 = vpop.permute.xlu0 %468 }
 0x632   :  { %vm470_vm13 = vcmp.eq.s32.totalorder %v469_v7, 1 }
 0x639   :  { %v546_v45 = vpop.permute.xlu0 %545 }
 0x63a   :  { %vm547_vm7 = vcmp.eq.s32.totalorder %v546_v45, 1 }
 0x64b   :  { %v223_v55 = vpop.f32.mrf.mxu1 }
 0x64c   :  { %v224_v56 = vadd.f32 %v1909_v13, %v223_v55  ;;  %v80_v55 = vld [vmem:[%s2371_s3 + $0x30] sm:$0xff] }
 0x64d   :  { %1522 = vmatmul.msk.f32.gmra.mxu0 %vm85_vm1, %v80_v55 }
 0x69e   :  { %v456_v63 = vpop.permute.xlu1 %455 }
 0x69f   :  { %v458_v0 = vadd.f32 %v456_v63, %v448_v62 }
 0x6a1   :  { %1613 = vtanh.f32 %v458_v0  ;;  %v472_v39 = vsel %vm470_vm13, %v458_v0, %v395_v61 }
 0x6a7   :  { %v1614_v1 = vpop.eup %1613 }
 0x6a8   :  { %461 = vrot.lane.b32.xlu2 %v1614_v1, %s1719_s4 }
 0x702   :  { %v462_v8 = vpop.permute.xlu2 %461 }
 0x703   :  { %v464_v11 = vmul.f32 %v462_v8, %v445_v58 }
 0x705   :  { %v2018_v12 = vsel %vm470_vm13, %v464_v11, 0.0  ;;  %v471_v14 = vsel %vm470_vm13, %v464_v11, %v1986_v35 }
 0x706   :  { %v478_v15 = vsel %vm2013_vm12, %v2018_v12, %v1988_v36  ;;  %480 = vrot.lane.b32.xlu1 %v471_v14, %s1720_s23 }
 0x778   :  { %v481_v19 = vpop.permute.xlu1 %480 }
 0x779   :  { %1539 = vmatmul.msk.f32.vlgmr.msrb.gmra.mxu3 %vm241_vm2, %v481_v19 }
 0x77a   :  { %804 = vmatpush.msrb.mxu3 %v1846_v2 }
 0x77c   :  { %805 = vmatpush.msrb.mxu3 %v1853_v3 }
 0x77e   :  { %806 = vmatpush.msrb.mxu3 %v1859_v4 }
 0x780   :  { %807 = vmatpush.msrb.mxu3 %v1870_v5 }
 0x7fc   :  { %v501_v22 = vpop.f32.mrf.mxu3 }
 0x7fd   :  { %v504_v24 = vadd.f32 %v501_v22, %v221_v21 }
 0x7ff   :  { %1615 = vtanh.f32 %v504_v24  ;;  %v1540_v27 = vmul.f32 -1.442695, %v504_v24 }
 0x801   :  { %1617 = vpow2.f32 %v1540_v27 }
 0x805   :  { %v1616_v26 = vpop.eup %1615 }
 0x806   :  { %527 = vrot.lane.b32.xlu2 %v1616_v26, %s1719_s4  ;;  %v146_v26 = vpop.f32.mrf.mxu0 }
 0x807   :  { %v1618_v28 = vpop.eup %1617  ;;  %v147_v27 = vadd.f32 %v1902_v9, %v146_v26 }
 0x808   :  { %v508_v29 = vadd.f32 1.0, %v1618_v28 }
 0x809   :  { %v160_v28 = vmax.f32 %v147_v27, 0.0 }
 0x80a   :  { %1619 = vrcp.f32 %v508_v29  ;;  %v520_v5 = vand.u32 2147483648, %v508_v29  ;;  %vm514_vm15 = vweird.f32 %v508_v29  ;;  %v518_v32 = vand.u32 2147483647, %v508_v29 }
 0x80b   :  { %1529 = vmatmul.msk.f32.gmra.mxu1 %vm169_vm3, %v160_v28 }
 0x80c   :  { %v521_v34 = vor.u32 1.1754944e-38, %v520_v5  ;;  %vm519_vm5 = vcmp.eq.f32.partialorder %v518_v32, 8.507059e+37 }
 0x810   :  { %v1620_v2 = vpop.eup %1619 }
 0x811   :  { %v510_v3 = vmul.f32 %v1620_v2, %v508_v29  ;;  %vm515_vm14 = vweird.f32 %v1620_v2  ;;  %v630_v29 = vstv %s629_s27 }
 0x812   :  { %vm516_vm4 = vmor %vm514_vm15, %vm515_vm14  ;;  %vm2069_vm13 = vcmp.eq.s32.totalorder %v630_v29, 1  ;;  %vm696_vm15 = vcmp.gt.s32.totalorder %v1920_v23, 5 }
 0x813   :  { %v511_v30 = vsub.f32 1.0, %v510_v3 }
 0x815   :  { %v512_v4 = vmul.f32 %v1620_v2, %v511_v30 }
 0x817   :  { %v513_v31 = vadd.f32 %v1620_v2, %v512_v4 }
 0x819   :  { %v517_v33 = vsel %vm516_vm4, %v1620_v2, %v513_v31 }
 0x81a   :  { %v522_v36 = vsel %vm519_vm5, %v521_v34, %v517_v33 }
 0x81b   :  { %v525_v40 = vmul.f32 %v522_v36, %v472_v39 }
 0x860   :  { %v528_v35 = vpop.permute.xlu2 %527 }
 0x861   :  { %v530_v37 = vmul.f32 %v528_v35, %v522_v36 }
 0x863   :  { %532 = vrot.lane.b32.xlu1 %v530_v37, %s1720_s23 }
 0x888   :  { %v226_v34 = vpop.f32.mrf.mxu1 }
 0x889   :  { %v227_v35 = vadd.f32 %v1909_v13, %v226_v34 }
 0x8d5   :  { %v533_v41 = vpop.permute.xlu1 %532 }
 0x8d6   :  { %v535_v42 = vadd.f32 %v533_v41, %v525_v40 }
 0x8d8   :  { %1621 = vtanh.f32 %v535_v42  ;;  %v549_v19 = vsel %vm547_vm7, %v535_v42, %v472_v39  ;;  %v697_v39 = vsel %vm696_vm15, 1, %v1721_v25 }
 0x8de   :  { %v1622_v43 = vpop.eup %1621 }
 0x8df   :  { %538 = vrot.lane.b32.xlu2 %v1622_v43, %s1719_s4 }
 0x939   :  { %v539_v46 = vpop.permute.xlu2 %538 }
 0x93a   :  { %v541_v47 = vmul.f32 %v539_v46, %v522_v36 }
 0x93c   :  { %v550_v48 = vsel %vm547_vm7, %v541_v47, 0.0  ;;  %v2046_v49 = vsel %vm547_vm7, %v541_v47, %v471_v14 }
 0x93d   :  { %v2048_v50 = vsel %vm554_vm6, %v550_v48, %v478_v15  ;;  %557 = vrot.lane.b32.xlu1 %v2046_v49, %s1720_s23 }
 0x9af   :  { %v558_v54 = vpop.permute.xlu1 %557 }
 0x9b0   :  { %1541 = vmatmul.msk.f32.vlgmr.msra.gmra.mxu2 %vm241_vm2, %v558_v54 }
 0xa33   :  { %v578_v57 = vpop.f32.mrf.mxu2 }
 0xa34   :  { %v581_v58 = vadd.f32 %v578_v57, %v224_v56 }
 0xa36   :  { %1623 = vtanh.f32 %v581_v58  ;;  %v1542_v61 = vmul.f32 -1.442695, %v581_v58 }
 0xa38   :  { %1625 = vpow2.f32 %v1542_v61  ;;  %v149_v61 = vpop.f32.mrf.mxu0 }
 0xa3c   :  { %v1624_v59 = vpop.eup %1623 }
 0xa3d   :  { %604 = vrot.lane.b32.xlu2 %v1624_v59, %s1719_s4 }
 0xa3e   :  { %v1626_v62 = vpop.eup %1625 }
 0xa3f   :  { %v585_v63 = vadd.f32 1.0, %v1626_v62  ;;  %v150_v62 = vadd.f32 %v1902_v9, %v149_v61 }
 0xa41   :  { %1627 = vrcp.f32 %v585_v63  ;;  %v597_v10 = vand.u32 2147483648, %v585_v63  ;;  %vm591_vm10 = vweird.f32 %v585_v63  ;;  %v595_v11 = vand.u32 2147483647, %v585_v63 }
 0xa43   :  { %v598_v14 = vor.u32 1.1754944e-38, %v597_v10  ;;  %vm596_vm12 = vcmp.eq.f32.partialorder %v595_v11, 8.507059e+37 }
 0xa45   :  { %622 = vperm.xlu2 %1582, %v620_v60  }
 0xa47   :  { %v1628_v0 = vpop.eup %1627 }
 0xa48   :  { %v587_v1 = vmul.f32 %v1628_v0, %v585_v63  ;;  %vm592_vm9 = vweird.f32 %v1628_v0  ;;  %v161_v63 = vmax.f32 %v150_v62, 0.0 }
 0xa49   :  { %vm593_vm11 = vmor %vm591_vm10, %vm592_vm9  ;;  %vm773_vm10 = vcmp.gt.s32.totalorder %v1920_v23, 6 }
 0xa4a   :  { %v588_v6 = vsub.f32 1.0, %v587_v1  ;;  %1530 = vmatmul.msk.f32.gmra.mxu1 %vm169_vm3, %v161_v63 }
 0xa4c   :  { %v589_v7 = vmul.f32 %v1628_v0, %v588_v6 }
 0xa4e   :  { %v590_v8 = vadd.f32 %v1628_v0, %v589_v7 }
 0xa50   :  { %v594_v12 = vsel %vm593_vm11, %v1628_v0, %v590_v8  ;;  %v707_v0 = vstv %s706_s29  ;;  %s1504_s29 = sshll.u32 %s1726_s28, 4  ;;  %s1505_s29 = int_to_ptr.vmem [resolvable:$true] %s1504_s29 }
 0xa51   :  { %v599_v16 = vsel %vm596_vm12, %v598_v14, %v594_v12  ;;  %vm708_vm8 = vcmp.eq.s32.totalorder %v707_v0, 1 }
 0xa52   :  { %v602_v20 = vmul.f32 %v599_v16, %v549_v19 }
 0xa97   :  { %v605_v15 = vpop.permute.xlu2 %604 }
 0xa98   :  { %v607_v17 = vmul.f32 %v605_v15, %v599_v16 }
 0xa9a   :  { %609 = vrot.lane.b32.xlu0 %v607_v17, %s1720_s23 }
 0xa9f   :  { %v623_v2 = vpop.permute.xlu2 %622 }
 0xaa0   :  { %vm624_vm14 = vcmp.eq.s32.totalorder %v623_v2, 1 }
 0xac7   :  { %v229_v14 = vpop.f32.mrf.mxu1 }
 0xac8   :  { %v230_v15 = vadd.f32 %v1909_v13, %v229_v14 }
 0xb0c   :  { %v610_v21 = vpop.permute.xlu0 %609 }
 0xb0d   :  { %v612_v22 = vadd.f32 %v610_v21, %v602_v20 }
 0xb0f   :  { %1629 = vtanh.f32 %v612_v22  ;;  %v626_v56 = vsel %vm624_vm14, %v612_v22, %v549_v19  ;;  %v774_v19 = vsel %vm773_vm10, 1, %v1721_v25 }
 0xb15   :  { %v1630_v24 = vpop.eup %1629 }
 0xb16   :  { %615 = vrot.lane.b32.xlu1 %v1630_v24, %s1719_s4 }
 0xb88   :  { %v616_v3 = vpop.permute.xlu1 %615 }
 0xb89   :  { %v618_v4 = vmul.f32 %v616_v3, %v599_v16 }
 0xb8b   :  { %v2074_v31 = vsel %vm624_vm14, %v618_v4, 0.0  ;;  %v625_v5 = vsel %vm624_vm14, %v618_v4, %v2046_v49 }
 0xb8c   :  { %v632_v32 = vsel %vm2069_vm13, %v2074_v31, %v2048_v50  ;;  %634 = vrot.lane.b32.xlu0 %v625_v5, %s1720_s23 }
 0xbfe   :  { %v635_v33 = vpop.permute.xlu0 %634 }
 0xbff   :  { %1543 = vmatmul.msk.f32.vlgmr.msra.gmra.mxu3 %vm241_vm2, %v635_v33  ;;  %v81_v33 = vld [vmem:[%s2371_s3 + $0x38] sm:$0xff] }
 0xc00   :  { %1523 = vmatmul.msk.f32.gmra.mxu0 %vm85_vm1, %v81_v33  ;;  %v1587_v33 = vld [vmem:[%s2356_s14] ss:$0 sm:$0xff] }
 0xc82   :  { %v655_v36 = vpop.f32.mrf.mxu3 }
 0xc83   :  { %v658_v37 = vadd.f32 %v655_v36, %v227_v35 }
 0xc85   :  { %1631 = vtanh.f32 %v658_v37  ;;  %v1544_v40 = vmul.f32 -1.442695, %v658_v37 }
 0xc87   :  { %1633 = vpow2.f32 %v1544_v40 }
 0xc8b   :  { %v1632_v38 = vpop.eup %1631 }
 0xc8c   :  { %681 = vrot.lane.b32.xlu1 %v1632_v38, %s1719_s4 }
 0xc8d   :  { %v1634_v41 = vpop.eup %1633 }
 0xc8e   :  { %v662_v42 = vadd.f32 1.0, %v1634_v41 }
 0xc90   :  { %1635 = vrcp.f32 %v662_v42  ;;  %v674_v48 = vand.u32 2147483648, %v662_v42  ;;  %vm668_vm5 = vweird.f32 %v662_v42  ;;  %v672_v49 = vand.u32 2147483647, %v662_v42 }
 0xc92   :  { %v675_v51 = vor.u32 1.1754944e-38, %v674_v48  ;;  %vm673_vm7 = vcmp.eq.f32.partialorder %v672_v49, 8.507059e+37 }
 0xc94   :  { %699 = vperm.xlu1 %1583, %v697_v39   ;;  %v784_v39 = vstv %s783_s22  ;;  %s860_s22 = scalar_select %p859_p7, 1, 0 }
 0xc95   :  { %vm2116_vm15 = vcmp.eq.s32.totalorder %v784_v39, 1  ;;  %v1015_v39 = vld [vmem:[%s2359_s17 + $0x18] sm:$0xff] }
 0xc96   :  { %v1636_v43 = vpop.eup %1635 }
 0xc97   :  { %v664_v44 = vmul.f32 %v1636_v43, %v662_v42  ;;  %vm669_vm4 = vweird.f32 %v1636_v43 }
 0xc98   :  { %vm670_vm6 = vmor %vm668_vm5, %vm669_vm4  ;;  %vm850_vm5 = vcmp.gt.s32.totalorder %v1920_v23, 7 }
 0xc99   :  { %v665_v45 = vsub.f32 1.0, %v664_v44 }
 0xc9b   :  { %v666_v46 = vmul.f32 %v1636_v43, %v665_v45 }
 0xc9d   :  { %v667_v47 = vadd.f32 %v1636_v43, %v666_v46  ;;  %v152_v46 = vpop.f32.mrf.mxu0 }
 0xc9e   :  { %v2133_v48 = vadd.f32 %v1902_v9, %v152_v46  ;;  %v851_v9 = vsel %vm850_vm5, 1, %v1721_v25 }
 0xc9f   :  { %v671_v50 = vsel %vm670_vm6, %v1636_v43, %v667_v47  ;;  %v1012_v43 = vld [vmem:[%s2359_s17] sm:$0xff] }
 0xca0   :  { %v676_v53 = vsel %vm673_vm7, %v675_v51, %v671_v50  ;;  %v162_v49 = vmax.f32 %v2133_v48, 0.0 }
 0xca1   :  { %v679_v57 = vmul.f32 %v676_v53, %v626_v56 }
 0xca2   :  { %1531 = vmatmul.msk.f32.gmra.mxu1 %vm169_vm3, %v162_v49 }
 0xcfe   :  { %v682_v52 = vpop.permute.xlu1 %681 }
 0xcff   :  { %v684_v54 = vmul.f32 %v682_v52, %v676_v53 }
 0xd01   :  { %686 = vrot.lane.b32.xlu2 %v684_v54, %s1720_s23 }
 0xd06   :  { %v700_v1 = vpop.permute.xlu1 %699 }
 0xd07   :  { %vm701_vm9 = vcmp.eq.s32.totalorder %v700_v1, 1 }
 0xd1f   :  { %v232_v51 = vpop.f32.mrf.mxu1 }
 0xd20   :  { %v233_v52 = vadd.f32 %v1909_v13, %v232_v51 }
 0xd5b   :  { %v687_v58 = vpop.permute.xlu2 %686 }
 0xd5c   :  { %v689_v59 = vadd.f32 %v687_v58, %v679_v57 }
 0xd5e   :  { %1637 = vtanh.f32 %v689_v59  ;;  %v703_v34 = vsel %vm701_vm9, %v689_v59, %v626_v56 }
 0xd64   :  { %v1638_v60 = vpop.eup %1637 }
 0xd65   :  { %692 = vrot.lane.b32.xlu0 %v1638_v60, %s1719_s4 }
 0xdd7   :  { %v693_v6 = vpop.permute.xlu0 %692 }
 0xdd8   :  { %v695_v7 = vmul.f32 %v693_v6, %v676_v53 }
 0xdda   :  { %v704_v8 = vsel %vm701_vm9, %v695_v7, 0.0  ;;  %v702_v10 = vsel %vm701_vm9, %v695_v7, %v625_v5 }
 0xddb   :  { %v2100_v11 = vsel %vm708_vm8, %v704_v8, %v632_v32  ;;  %711 = vrot.lane.b32.xlu2 %v702_v10, %s1720_s23 }
 0xe35   :  { %v712_v12 = vpop.permute.xlu2 %711 }
 0xe36   :  { %1545 = vmatmul.msk.f32.vlgmr.msrb.gmra.mxu2 %vm241_vm2, %v712_v12 }
 0xeb9   :  { %v732_v16 = vpop.f32.mrf.mxu2 }
 0xeba   :  { %v735_v17 = vadd.f32 %v732_v16, %v230_v15  ;;  %v901_v16 = vld [vmem:[%s2355_s13 + $0x18] sm:$0xff] }
 0xebb   :  { %923 = vmatpush.msra.mxu3 %v901_v16 }
 0xebc   :  { %1639 = vtanh.f32 %v735_v17  ;;  %v1546_v20 = vmul.f32 -1.442695, %v735_v17  ;;  %v867_v17 = vld [vmem:[%s2353_s11 + $0x18] sm:$0xff] }
 0xebd   :  { %889 = vmatpush.msra.mxu2 %v867_v17 }
 0xebe   :  { %1641 = vpow2.f32 %v1546_v20  ;;  %v899_v20 = vld [vmem:[%s2355_s13 + $0x8] sm:$0xff] }
 0xec2   :  { %v1640_v18 = vpop.eup %1639 }
 0xec3   :  { %758 = vrot.lane.b32.xlu0 %v1640_v18, %s1719_s4  ;;  %v900_v18 = vld [vmem:[%s2355_s13 + $0x10] sm:$0xff] }
 0xec4   :  { %v1642_v21 = vpop.eup %1641  ;;  %924 = vmatpush.msra.mxu3 %v900_v18 }
 0xec5   :  { %v739_v22 = vadd.f32 1.0, %v1642_v21  ;;  %v865_v21 = vld [vmem:[%s2353_s11 + $0x8] sm:$0xff] }
 0xec6   :  { %925 = vmatpush.msra.mxu3 %v899_v20 }
 0xec7   :  { %1643 = vrcp.f32 %v739_v22  ;;  %v751_v2 = vand.u32 2147483648, %v739_v22  ;;  %vm745_vm12 = vweird.f32 %v739_v22  ;;  %v749_v3 = vand.u32 2147483647, %v739_v22 }
 0xec9   :  { %v752_v4 = vor.u32 1.1754944e-38, %v751_v2  ;;  %vm750_vm14 = vcmp.eq.f32.partialorder %v749_v3, 8.507059e+37 }
 0xecb   :  { %776 = vperm.xlu0 %1584, %v774_v19   ;;  %v866_v19 = vld [vmem:[%s2353_s11 + $0x10] sm:$0xff] }
 0xecc   :  { %890 = vmatpush.msra.mxu2 %v866_v19 }
 0xecd   :  { %v1644_v24 = vpop.eup %1643 }
 0xece   :  { %v741_v26 = vmul.f32 %v1644_v24, %v739_v22  ;;  %vm746_vm11 = vweird.f32 %v1644_v24  ;;  %v898_v22 = vld [vmem:[%s2355_s13] sm:$0xff]  ;;  %891 = vmatpush.msra.mxu2 %v865_v21 }
 0xecf   :  { %vm747_vm13 = vmor %vm745_vm12, %vm746_vm11  ;;  %926 = vmatpush.msra.mxu3 %v898_v22 }
 0xed0   :  { %v742_v27 = vsub.f32 1.0, %v741_v26 }
 0xed2   :  { %v743_v28 = vmul.f32 %v1644_v24, %v742_v27 }
 0xed4   :  { %v744_v29 = vadd.f32 %v1644_v24, %v743_v28 }
 0xed6   :  { %v748_v30 = vsel %vm747_vm13, %v1644_v24, %v744_v29  ;;  %v861_v24 = vstv %s860_s22  ;;  %s2382_s22 = sld [smem:[#allocation11_spill]]  ;;  %vm962_vm13 = vcmask 64512  }
 0xed7   :  { %v753_v5 = vsel %vm750_vm14, %v752_v4, %v748_v30  ;;  %vm862_vm10 = vcmp.eq.s32.totalorder %v861_v24, 1  ;;  %v864_v30 = vld [vmem:[%s2353_s11] sm:$0xff] }
 0xed8   :  { %v756_v35 = vmul.f32 %v753_v5, %v703_v34  ;;  %892 = vmatpush.msra.mxu2 %v864_v30 }
 0xf35   :  { %v759_v31 = vpop.permute.xlu0 %758 }
 0xf36   :  { %v761_v32 = vmul.f32 %v759_v31, %v753_v5 }
 0xf38   :  { %763 = vrot.lane.b32.xlu1 %v761_v32, %s1720_s23  ;;  %v1588_v32 = vld [vmem:[%s2354_s12] ss:$0 sm:$0xff] }
 0xf3d   :  { %v777_v40 = vpop.permute.xlu0 %776 }
 0xf3e   :  { %vm778_vm4 = vcmp.eq.s32.totalorder %v777_v40, 1 }
 0xfaa   :  { %v764_v36 = vpop.permute.xlu1 %763 }
 0xfab   :  { %v766_v37 = vadd.f32 %v764_v36, %v756_v35 }
 0xfad   :  { %1645 = vtanh.f32 %v766_v37  ;;  %v2146_v8 = vsel %vm778_vm4, %v766_v37, %v703_v34 }
 0xfb3   :  { %v1646_v38 = vpop.eup %1645 }
 0xfb4   :  { %769 = vrot.lane.b32.xlu2 %v1646_v38, %s1719_s4 }
0x100e   :  { %v770_v41 = vpop.permute.xlu2 %769 }
0x100f   :  { %v772_v42 = vmul.f32 %v770_v41, %v753_v5  ;;  %v2198_v5 = vld [vmem:[%s2357_s15 + $0x8] sm:$0xff]  ;;  %v1014_v41 = vld [vmem:[%s2359_s17 + $0x10] sm:$0xff] }
0x1010   :  { %1197 = vmatpush.msrb.mxu1 %v2198_v5  ;;  %1306 = vmatpush.msra.mxu0 %v2198_v5 }
0x1011   :  { %v2121_v44 = vsel %vm778_vm4, %v772_v42, 0.0  ;;  %v2124_v45 = vsel %vm778_vm4, %v772_v42, %v702_v10  ;;  %v1013_v42 = vld [vmem:[%s2359_s17 + $0x8] sm:$0xff] }
0x1012   :  { %788 = vrot.lane.b32.xlu1 %v2124_v45, %s1720_s23  ;;  %v786_v47 = vsel %vm2116_vm15, %v2121_v44, %v2100_v11  ;;  %v2205_v11 = vld [vmem:[%s2357_s15] sm:$0xff] }
0x1013   :  { %1198 = vmatpush.msrb.mxu1 %v2205_v11  ;;  %1307 = vmatpush.msra.mxu0 %v2205_v11  ;;  %v959_v44 = vld [vmem:[%s2382_s22] sm:$0xff] }
0x1014   :  { %vm960_vm12 = vcmp.gt.f32.partialorder %v959_v44, 0.5 }
0x1084   :  { %v789_v50 = vpop.permute.xlu1 %788 }
0x1085   :  { %1547 = vmatmul.msk.f32.vlgmr.msrb.gmra.mxu3 %vm241_vm2, %v789_v50 }
0x1108   :  { %v809_v53 = vpop.f32.mrf.mxu3 }
0x1109   :  { %v812_v54 = vadd.f32 %v809_v53, %v233_v52 }
0x110b   :  { %1647 = vtanh.f32 %v812_v54  ;;  %v1548_v56 = vmul.f32 -1.442695, %v812_v54 }
0x110d   :  { %1649 = vpow2.f32 %v1548_v56 }
0x1111   :  { %v1648_v55 = vpop.eup %1647 }
0x1112   :  { %835 = vrot.lane.b32.xlu2 %v1648_v55, %s1719_s4 }
0x1113   :  { %v1650_v57 = vpop.eup %1649 }
0x1114   :  { %v816_v58 = vadd.f32 1.0, %v1650_v57 }
0x1116   :  { %1651 = vrcp.f32 %v816_v58  ;;  %v828_v63 = vand.u32 2147483648, %v816_v58  ;;  %vm822_vm7 = vweird.f32 %v816_v58  ;;  %v826_v0 = vand.u32 2147483647, %v816_v58 }
0x1118   :  { %v829_v23 = vor.u32 1.1754944e-38, %v828_v63  ;;  %vm827_vm9 = vcmp.eq.f32.partialorder %v826_v0, 8.507059e+37 }
0x111a   :  { %853 = vperm.xlu2 %1582, %v851_v9  }
0x111c   :  { %v1652_v59 = vpop.eup %1651 }
0x111d   :  { %v818_v60 = vmul.f32 %v1652_v59, %v816_v58  ;;  %vm823_vm6 = vweird.f32 %v1652_v59 }
0x111e   :  { %vm824_vm8 = vmor %vm822_vm7, %vm823_vm6 }
0x111f   :  { %v819_v61 = vsub.f32 1.0, %v818_v60 }
0x1121   :  { %v820_v13 = vmul.f32 %v1652_v59, %v819_v61 }
0x1123   :  { %v821_v62 = vadd.f32 %v1652_v59, %v820_v13 }
0x1125   :  { %v825_v1 = vsel %vm824_vm8, %v1652_v59, %v821_v62 }
0x1126   :  { %v830_v6 = vsel %vm827_vm9, %v829_v23, %v825_v1  ;;  %v1010_v1 = vld [vmem:[%s2358_s16] sm:$0xff] }
0x1127   :  { %v833_v10 = vmul.f32 %v830_v6, %v2146_v8 }
0x116c   :  { %v836_v25 = vpop.permute.xlu2 %835 }
0x116d   :  { %v838_v7 = vmul.f32 %v836_v25, %v830_v6 }
0x116f   :  { %840 = vrot.lane.b32.xlu0 %v838_v7, %s1720_s23 }
0x1174   :  { %v2175_v26 = vpop.permute.xlu2 %853 }
0x1175   :  { %vm855_vm11 = vcmp.eq.s32.totalorder %v2175_v26, 1  ;;  %v1691_v26 = vld [vmem:[%s2348_s6] sm:$0x3] }
0x11e1   :  { %v841_v12 = vpop.permute.xlu0 %840 }
0x11e2   :  { %v2149_v14 = vadd.f32 %v841_v12, %v833_v10 }
0x11e4   :  { %1653 = vtanh.f32 %v2149_v14 }
0x11ea   :  { %v1654_v15 = vpop.eup %1653 }
0x11eb   :  { %846 = vrot.lane.b32.xlu1 %v1654_v15, %s1719_s4 }
0x125d   :  { %v847_v27 = vpop.permute.xlu1 %846 }
0x125e   :  { %v849_v28 = vmul.f32 %v847_v27, %v830_v6  ;;  %v1589_v6 = vld [vmem:[%s2360_s18] ss:$0 sm:$0xff] }
0x1260   :  { %v858_v29 = vsel %vm855_vm11, %v849_v28, 0.0  ;;  %v856_v2 = vsel %vm855_vm11, %v849_v28, %v2124_v45 }
0x1261   :  { %907 = vrot.lane.b32.xlu1 %v856_v2, %s1720_s23  ;;  %v863_v3 = vsel %vm862_vm10, %v858_v29, %v786_v47 }
0x1262   :  { %873 = vrot.lane.b32.xlu0 %v863_v3, %s1720_s23 }
0x12d3   :  { %v908_v4 = vpop.permute.xlu1 %907 }
0x12d4   :  { %v874_v31 = vpop.permute.xlu0 %873  ;;  %1550 = vmatmul.msk.f32.vlgmr.msra.gmra.mxu3 %vm241_vm2, %v908_v4 }
0x12d5   :  { %1549 = vmatmul.msk.f32.vlgmr.msra.gmra.mxu2 %vm241_vm2, %v874_v31 }
0x1357   :  { %v928_v34 = vpop.f32.mrf.mxu3 }
0x1358   :  { %v894_v35 = vpop.f32.mrf.mxu2  ;;  %v929_v37 = vadd.f32 %v1587_v33, %v928_v34  ;;  %v2260_v33 = vsel %vm855_vm11, %v2149_v14, %v2146_v8  ;;  %v1067_v8 = vld [vmem:[%s2361_s19 + $0x8] sm:$0xff]  ;;  %v1066_v14 = vld [vmem:[%s2361_s19] sm:$0xff] }
0x1359   :  { %v895_v36 = vadd.f32 %v1588_v32, %v894_v35 }
0x135a   :  { %v931_v40 = vmax.f32 %v929_v37, 0.0 }
0x135b   :  { %v897_v38 = vmax.f32 %v895_v36, 0.0 }
0x135d   :  { %1551 = vmatpush.xpose.msk.msrb.mxu2 %vm169_vm3, %v897_v38  ;;  %1005 = vmatpush.msrb.mxu3 %v897_v38  ;;  %v1069_v38 = vld [vmem:[%s2361_s19 + $0x18] sm:$0xff] }
0x135e   :  { %1366 = vmatpush.msra.mxu1 %v1069_v38 }
0x1360   :  { %1552 = vmatmul.msk.f32.vlgmr.msrb.gmra.mxu2 %vm169_vm3, %v931_v40 }
0x1361   :  { %1028 = vmatpush.msra.mxu2 %v1015_v39  ;;  %v1068_v39 = vld [vmem:[%s2361_s19 + $0x10] sm:$0xff] }
0x1362   :  { %1367 = vmatpush.msra.mxu1 %v1068_v39 }
0x1363   :  { %1029 = vmatpush.msra.mxu2 %v1014_v41 }
0x1364   :  { %1368 = vmatpush.msra.mxu1 %v1067_v8 }
0x1365   :  { %1030 = vmatpush.msra.mxu2 %v1013_v42 }
0x1366   :  { %1369 = vmatpush.msra.mxu1 %v1066_v14 }
0x1367   :  { %1031 = vmatpush.msra.mxu2 %v1012_v43  ;;  %v2288_v43 = vld [vmem:[%s2362_s20] ss:$0 sm:$0xff]  ;;  %s1724_s20 = smov 4  }
0x1368   :  { %1554 = vmatmul.msk.f32.vlgmr.msra.gmra.mxu2 %vm241_vm2, %v908_v4 }
0x1369   :  { %1085 = vmatpush.msrb.mxu2 %v2198_v5 }
0x136b   :  { %1086 = vmatpush.msrb.mxu2 %v2205_v11 }
0x136d   :  { %1257 = vmatpush.msra.mxu2 %v1069_v38 }
0x136f   :  { %1258 = vmatpush.msra.mxu2 %v1068_v39 }
0x1370   :  { %1556 = vmatmul.msk.f32.vlgmr.msrb.gmra.mxu2 %vm169_vm3, %v162_v49  ;;  %v1011_v49 = vld [vmem:[%s2358_s16 + $0x8] sm:$0xff] }
0x1371   :  { %1053 = vmatpush.msra.mxu3 %v1011_v49  ;;  %1259 = vmatpush.msra.mxu2 %v1067_v8 }
0x1373   :  { %1054 = vmatpush.msra.mxu3 %v1010_v1  ;;  %1260 = vmatpush.msra.mxu2 %v1066_v14 }
0x1375   :  { %1569 = vmatpush.msk.msrb.mxu2 %vm110_vm0, %v1691_v26 }
0x13e3   :  { %v955_v45 = vpop.f32.mrf.mxu2 }
0x13e4   :  { %v958_v46 = vmul.f32 0.25, %v955_v45 }
0x13e6   :  { %v961_v47 = vsel %vm960_vm12, %v958_v46, -1e+09 }
0x13e7   :  { %v963_v50 = vsel %vm962_vm13, %v961_v47, -inf }
0x13e8   :  { %964 = vmax.xlane.f32.xlu2 %v963_v50 }
0x13eb   :  { %v1033_v25 = vpop.f32.mrf.mxu2 }
0x13f3   :  { %v1088_v15 = vpop.f32.mrf.mxu2 }
0x145b   :  { %v965_v51 = vpop.xlane.xlu2 %964 }
0x145c   :  { %v966_v52 = vsub.f32 %v961_v47, %v965_v51 }
0x145e   :  { %v967_v53 = vmul.f32 1.442695, %v966_v52 }
0x1460   :  { %1655 = vpow2.f32 %v967_v53 }
0x1466   :  { %v1656_v54 = vpop.eup %1655 }
0x1467   :  { %v969_v48 = vsel %vm962_vm13, %v1656_v54, 0.0 }
0x1468   :  { %970 = vadd.xlane.f32.xlu0 %v969_v48 }
0x14db   :  { %v971_v55 = vpop.xlane.xlu0 %970 }
0x14dc   :  { %1657 = vrcp.f32 %v971_v55  ;;  %v983_v58 = vand.u32 2147483648, %v971_v55  ;;  %v981_v60 = vand.u32 2147483647, %v971_v55  ;;  %vm977_vm15 = vweird.f32 %v971_v55 }
0x14de   :  { %v984_v13 = vor.u32 1.1754944e-38, %v983_v58  ;;  %vm982_vm5 = vcmp.eq.f32.partialorder %v981_v60, 8.507059e+37 }
0x14e2   :  { %v1658_v9 = vpop.eup %1657 }
0x14e3   :  { %v973_v56 = vmul.f32 %v1658_v9, %v971_v55  ;;  %vm978_vm14 = vweird.f32 %v1658_v9 }
0x14e4   :  { %vm979_vm4 = vmor %vm977_vm15, %vm978_vm14 }
0x14e5   :  { %v974_v57 = vsub.f32 1.0, %v973_v56 }
0x14e7   :  { %v975_v59 = vmul.f32 %v1658_v9, %v974_v57 }
0x14e9   :  { %v976_v61 = vadd.f32 %v1658_v9, %v975_v59 }
0x14eb   :  { %v980_v62 = vsel %vm979_vm4, %v1658_v9, %v976_v61 }
0x14ec   :  { %v985_v63 = vsel %vm982_vm5, %v984_v13, %v980_v62 }
0x14ed   :  { %v986_v0 = vmul.f32 %v1656_v54, %v985_v63 }
0x14ef   :  { %1553 = vmatmul.msk.f32.vlgmr.msrb.gmra.mxu3 %vm962_vm13, %v986_v0 }
0x14f0   :  { %1148 = vmatpush.msrb.mxu3 %v1069_v38 }
0x14f2   :  { %1149 = vmatpush.msrb.mxu3 %v1068_v39 }
0x14f4   :  { %1150 = vmatpush.msrb.mxu3 %v1067_v8 }
0x14f6   :  { %1151 = vmatpush.msrb.mxu3 %v1066_v14 }
0x1572   :  { %v1007_v23 = vpop.f32.mrf.mxu3 }
0x1573   :  { %1555 = vmatmul.msk.f32.vlgmr.msra.gmra.mxu3 %vm169_vm3, %v1007_v23 }
0x1574   :  { %1564 = vmatpush.msk.msra.mxu3 %vm110_vm0, %v1691_v26 }
0x15f6   :  { %v1056_v7 = vpop.f32.mrf.mxu3 }
0x15f7   :  { %v1057_v10 = vadd.f32 %v1056_v7, %v1033_v25 }
0x15f9   :  { %v2251_v12 = vadd.f32 %v1589_v6, %v1057_v10 }
0x15fb   :  { %v1089_v16 = vadd.f32 %v1088_v15, %v2251_v12 }
0x15fd   :  { %1659 = vtanh.f32 %v1089_v16  ;;  %v1557_v18 = vmul.f32 -1.442695, %v1089_v16 }
0x15ff   :  { %1661 = vpow2.f32 %v1557_v18 }
0x1603   :  { %v1660_v17 = vpop.eup %1659 }
0x1604   :  { %1113 = vrot.lane.b32.xlu1 %v1660_v17, %s1719_s4 }
0x1605   :  { %v1662_v19 = vpop.eup %1661 }
0x1606   :  { %v1094_v20 = vadd.f32 1.0, %v1662_v19 }
0x1608   :  { %1663 = vrcp.f32 %v1094_v20  ;;  %v1106_v29 = vand.u32 2147483648, %v1094_v20  ;;  %vm1100_vm7 = vweird.f32 %v1094_v20  ;;  %v1104_v2 = vand.u32 2147483647, %v1094_v20 }
0x160a   :  { %v1107_v30 = vor.u32 1.1754944e-38, %v1106_v29  ;;  %vm1105_vm9 = vcmp.eq.f32.partialorder %v1104_v2, 8.507059e+37 }
0x160e   :  { %v1664_v21 = vpop.eup %1663 }
0x160f   :  { %v1096_v22 = vmul.f32 %v1664_v21, %v1094_v20  ;;  %vm1101_vm6 = vweird.f32 %v1664_v21 }
0x1610   :  { %vm1102_vm8 = vmor %vm1100_vm7, %vm1101_vm6 }
0x1611   :  { %v1097_v24 = vsub.f32 1.0, %v1096_v22 }
0x1613   :  { %v1098_v27 = vmul.f32 %v1664_v21, %v1097_v24 }
0x1615   :  { %v1099_v28 = vadd.f32 %v1664_v21, %v1098_v27 }
0x1617   :  { %v1103_v3 = vsel %vm1102_vm8, %v1664_v21, %v1099_v28 }
0x1618   :  { %v1108_v31 = vsel %vm1105_vm9, %v1107_v30, %v1103_v3  ;;  %vm1494_vm9 = vcmask 31744  }
0x1619   :  { %v1111_v34 = vmul.f32 %v1108_v31, %v2260_v33 }
0x1676   :  { %v1114_v4 = vpop.permute.xlu1 %1113 }
0x1677   :  { %v1116_v32 = vmul.f32 %v1114_v4, %v1108_v31 }
0x1679   :  { %1118 = vrot.lane.b32.xlu1 %v1116_v32, %s1720_s23 }
0x16eb   :  { %v1119_v35 = vpop.permute.xlu1 %1118 }
0x16ec   :  { %v1121_v36 = vadd.f32 %v1119_v35, %v1111_v34 }
0x16ee   :  { %1665 = vtanh.f32 %v1121_v36 }
0x16f4   :  { %v1666_v37 = vpop.eup %1665 }
0x16f5   :  { %1124 = vrot.lane.b32.xlu1 %v1666_v37, %s1719_s4 }
0x1767   :  { %v1125_v40 = vpop.permute.xlu1 %1124 }
0x1768   :  { %v1127_v41 = vmul.f32 %v1125_v40, %v1108_v31 }
0x176a   :  { %1132 = vrot.lane.b32.xlu1 %v1127_v41, %s1720_s23 }
0x17dc   :  { %v1133_v42 = vpop.permute.xlu1 %1132 }
0x17dd   :  { %1558 = vmatmul.msk.f32.vlgmr.msrb.gmra.mxu3 %vm241_vm2, %v1133_v42 }
0x17de   :  { %1415 = vmatpush.msrb.mxu3 %v2198_v5  ;;  %v2298_v5 = vld [vmem:[%s2349_s7] ss:$0 sm:$0xff]  ;;  %s1723_s7 = smov 2  }
0x17e0   :  { %1416 = vmatpush.msrb.mxu3 %v2205_v11 }
0x1860   :  { %v1153_v44 = vpop.f32.mrf.mxu3 }
0x1861   :  { %v2291_v45 = vadd.f32 %v2288_v43, %v1153_v44 }
0x1863   :  { %1560 = vmatmul.msk.f32.vlgmr.msrb.gmra.mxu0 %vm85_vm1, %v2291_v45 }
0x1864   :  { %1475 = vmatpush.msrb.mxu0 %v1069_v38 }
0x1866   :  { %1476 = vmatpush.msrb.mxu0 %v1068_v39 }
0x1868   :  { %1477 = vmatpush.msrb.mxu0 %v1067_v8 }
0x186a   :  { %1478 = vmatpush.msrb.mxu0 %v1066_v14 }
0x18e0   :  { %v1176_v46 = vpop.f32.mrf.mxu0 }
0x18e1   :  { %v1177_v11 = vadd.f32 %v2298_v5, %v1176_v46 }
0x18e3   :  { %v1179_v47 = vmax.f32 %v1177_v11, 0.0 }
0x18e5   :  { %1561 = vmatmul.msk.f32.vlgmr.msrb.gmra.mxu1 %vm169_vm3, %v1179_v47 }
0x1962   :  { %v1200_v50 = vpop.f32.mrf.mxu1 }
0x1963   :  { %v1201_v51 = vadd.f32 %v1200_v50, %v2251_v12 }
0x1965   :  { %1667 = vtanh.f32 %v1201_v51  ;;  %v1562_v53 = vmul.f32 -1.442695, %v1201_v51 }
0x1967   :  { %1669 = vpow2.f32 %v1562_v53 }
0x196b   :  { %v1668_v52 = vpop.eup %1667 }
0x196c   :  { %1225 = vrot.lane.b32.xlu1 %v1668_v52, %s1719_s4 }
0x196d   :  { %v1670_v54 = vpop.eup %1669 }
0x196e   :  { %v1206_v48 = vadd.f32 1.0, %v1670_v54 }
0x1970   :  { %1671 = vrcp.f32 %v1206_v48  ;;  %v1218_v58 = vand.u32 2147483648, %v1206_v48  ;;  %vm1212_vm10 = vweird.f32 %v1206_v48  ;;  %v1216_v59 = vand.u32 2147483647, %v1206_v48 }
0x1972   :  { %v1219_v61 = vor.u32 1.1754944e-38, %v1218_v58  ;;  %vm1217_vm12 = vcmp.eq.f32.partialorder %v1216_v59, 8.507059e+37 }
0x1976   :  { %v1672_v49 = vpop.eup %1671 }
0x1977   :  { %v1208_v55 = vmul.f32 %v1672_v49, %v1206_v48  ;;  %vm1213_vm0 = vweird.f32 %v1672_v49 }
0x1978   :  { %vm1214_vm11 = vmor %vm1212_vm10, %vm1213_vm0  ;;  %vm1496_vm0 = vcmask 48128  }
0x1979   :  { %v1209_v9 = vsub.f32 1.0, %v1208_v55 }
0x197b   :  { %v1210_v56 = vmul.f32 %v1672_v49, %v1209_v9 }
0x197d   :  { %v1211_v57 = vadd.f32 %v1672_v49, %v1210_v56 }
0x197f   :  { %v1215_v60 = vsel %vm1214_vm11, %v1672_v49, %v1211_v57 }
0x1980   :  { %v1220_v62 = vsel %vm1217_vm12, %v1219_v61, %v1215_v60 }
0x1981   :  { %v1223_v0 = vmul.f32 %v1220_v62, %v2260_v33 }
0x19de   :  { %v1226_v13 = vpop.permute.xlu1 %1225 }
0x19df   :  { %v1228_v63 = vmul.f32 %v1226_v13, %v1220_v62 }
0x19e1   :  { %1230 = vrot.lane.b32.xlu2 %v1228_v63, %s1720_s23 }
0x1a3b   :  { %v1231_v1 = vpop.permute.xlu2 %1230 }
0x1a3c   :  { %v1233_v23 = vadd.f32 %v1231_v1, %v1223_v0 }
0x1a3e   :  { %1673 = vtanh.f32 %v1233_v23 }
0x1a44   :  { %v1674_v25 = vpop.eup %1673 }
0x1a45   :  { %1236 = vrot.lane.b32.xlu1 %v1674_v25, %s1719_s4 }
0x1ab7   :  { %v1237_v6 = vpop.permute.xlu1 %1236 }
0x1ab8   :  { %v1239_v7 = vmul.f32 %v1237_v6, %v1220_v62 }
0x1aba   :  { %1241 = vrot.lane.b32.xlu0 %v1239_v7, %s1720_s23 }
0x1b2c   :  { %v1242_v10 = vpop.permute.xlu0 %1241 }
0x1b2d   :  { %1563 = vmatmul.msk.f32.vlgmr.msra.gmra.mxu2 %vm241_vm2, %v1242_v10 }
0x1bb0   :  { %v1262_v15 = vpop.f32.mrf.mxu2 }
0x1bb1   :  { %v2310_v16 = vadd.f32 %v2288_v43, %v1262_v15 }
0x1bb3   :  { %1565 = vmatmul.msk.f32.vlgmr.msra.gmra.mxu3 %vm85_vm1, %v2310_v16 }
0x1c36   :  { %v1285_v17 = vpop.f32.mrf.mxu3 }
0x1c37   :  { %v1286_v18 = vadd.f32 %v2298_v5, %v1285_v17 }
0x1c39   :  { %v1288_v19 = vmax.f32 %v1286_v18, 0.0 }
0x1c3b   :  { %1566 = vmatmul.msk.f32.vlgmr.msra.gmra.mxu0 %vm169_vm3, %v1288_v19 }
0x1cb8   :  { %v1309_v20 = vpop.f32.mrf.mxu0 }
0x1cb9   :  { %v1310_v21 = vadd.f32 %v1309_v20, %v2251_v12 }
0x1cbb   :  { %1675 = vtanh.f32 %v1310_v21  ;;  %v1567_v24 = vmul.f32 -1.442695, %v1310_v21 }
0x1cbd   :  { %1677 = vpow2.f32 %v1567_v24 }
0x1cc1   :  { %v1676_v22 = vpop.eup %1675 }
0x1cc2   :  { %1334 = vrot.lane.b32.xlu1 %v1676_v22, %s1719_s4 }
0x1cc3   :  { %v1678_v27 = vpop.eup %1677 }
0x1cc4   :  { %v1315_v28 = vadd.f32 1.0, %v1678_v27 }
0x1cc6   :  { %1679 = vrcp.f32 %v1315_v28  ;;  %v1327_v31 = vand.u32 2147483648, %v1315_v28  ;;  %vm1321_vm15 = vweird.f32 %v1315_v28  ;;  %v1325_v32 = vand.u32 2147483647, %v1315_v28 }
0x1cc8   :  { %v1328_v35 = vor.u32 1.1754944e-38, %v1327_v31  ;;  %vm1326_vm5 = vcmp.eq.f32.partialorder %v1325_v32, 8.507059e+37 }
0x1ccc   :  { %v1680_v29 = vpop.eup %1679 }
0x1ccd   :  { %v1317_v2 = vmul.f32 %v1680_v29, %v1315_v28  ;;  %vm1322_vm14 = vweird.f32 %v1680_v29 }
0x1cce   :  { %vm1323_vm4 = vmor %vm1321_vm15, %vm1322_vm14 }
0x1ccf   :  { %v1318_v3 = vsub.f32 1.0, %v1317_v2 }
0x1cd1   :  { %v1319_v30 = vmul.f32 %v1680_v29, %v1318_v3 }
0x1cd3   :  { %v1320_v4 = vadd.f32 %v1680_v29, %v1319_v30 }
0x1cd5   :  { %v1324_v34 = vsel %vm1323_vm4, %v1680_v29, %v1320_v4 }
0x1cd6   :  { %v1329_v37 = vsel %vm1326_vm5, %v1328_v35, %v1324_v34 }
0x1cd7   :  { %v1332_v39 = vmul.f32 %v1329_v37, %v2260_v33 }
0x1d34   :  { %v1335_v36 = vpop.permute.xlu1 %1334 }
0x1d35   :  { %v1337_v38 = vmul.f32 %v1335_v36, %v1329_v37 }
0x1d37   :  { %1339 = vrot.lane.b32.xlu1 %v1337_v38, %s1720_s23 }
0x1da9   :  { %v1340_v8 = vpop.permute.xlu1 %1339 }
0x1daa   :  { %v1342_v14 = vadd.f32 %v1340_v8, %v1332_v39 }
0x1dac   :  { %1681 = vtanh.f32 %v1342_v14 }
0x1db2   :  { %v1682_v26 = vpop.eup %1681 }
0x1db3   :  { %1345 = vrot.lane.b32.xlu2 %v1682_v26, %s1719_s4 }
0x1e0d   :  { %v1346_v40 = vpop.permute.xlu2 %1345 }
0x1e0e   :  { %v1348_v41 = vmul.f32 %v1346_v40, %v1329_v37 }
0x1e10   :  { %1350 = vrot.lane.b32.xlu0 %v1348_v41, %s1720_s23 }
0x1e82   :  { %v1351_v42 = vpop.permute.xlu0 %1350 }
0x1e83   :  { %1568 = vmatmul.msk.f32.vlgmr.msra.gmra.mxu1 %vm241_vm2, %v1351_v42 }
0x1f00   :  { %v1371_v44 = vpop.f32.mrf.mxu1 }
0x1f01   :  { %v1372_v46 = vadd.f32 %v2288_v43, %v1371_v44 }
0x1f03   :  { %1570 = vmatmul.msk.f32.vlgmr.msrb.gmra.mxu2 %vm85_vm1, %v1372_v46 }
0x1f86   :  { %v1394_v11 = vpop.f32.mrf.mxu2 }
0x1f87   :  { %v1395_v47 = vadd.f32 %v2298_v5, %v1394_v11 }
0x1f89   :  { %v1397_v50 = vmax.f32 %v1395_v47, 0.0 }
0x1f8b   :  { %1571 = vmatmul.msk.f32.vlgmr.msrb.gmra.mxu3 %vm169_vm3, %v1397_v50 }
0x200e   :  { %v1418_v51 = vpop.f32.mrf.mxu3 }
0x200f   :  { %v1419_v52 = vadd.f32 %v1418_v51, %v2251_v12 }
0x2011   :  { %1683 = vtanh.f32 %v1419_v52  ;;  %v1572_v54 = vmul.f32 -1.442695, %v1419_v52 }
0x2013   :  { %1685 = vpow2.f32 %v1572_v54 }
0x2017   :  { %v1684_v53 = vpop.eup %1683 }
0x2018   :  { %1443 = vrot.lane.b32.xlu1 %v1684_v53, %s1719_s4 }
0x2019   :  { %v1686_v48 = vpop.eup %1685 }
0x201a   :  { %v1424_v49 = vadd.f32 1.0, %v1686_v48 }
0x201c   :  { %1687 = vrcp.f32 %v1424_v49  ;;  %v1436_v58 = vand.u32 2147483648, %v1424_v49  ;;  %vm1430_vm3 = vweird.f32 %v1424_v49  ;;  %v1434_v59 = vand.u32 2147483647, %v1424_v49 }
0x201e   :  { %v1437_v60 = vor.u32 1.1754944e-38, %v1436_v58  ;;  %vm1435_vm8 = vcmp.eq.f32.partialorder %v1434_v59, 8.507059e+37 }
0x2022   :  { %v1688_v55 = vpop.eup %1687 }
0x2023   :  { %v1426_v9 = vmul.f32 %v1688_v55, %v1424_v49  ;;  %vm1431_vm6 = vweird.f32 %v1688_v55 }
0x2024   :  { %vm1432_vm7 = vmor %vm1430_vm3, %vm1431_vm6 }
0x2025   :  { %v1427_v56 = vsub.f32 1.0, %v1426_v9 }
0x2027   :  { %v1428_v57 = vmul.f32 %v1688_v55, %v1427_v56 }
0x2029   :  { %v1429_v5 = vadd.f32 %v1688_v55, %v1428_v57 }
0x202b   :  { %v1433_v12 = vsel %vm1432_vm7, %v1688_v55, %v1429_v5 }
0x202c   :  { %v1438_v13 = vsel %vm1435_vm8, %v1437_v60, %v1433_v12 }
0x202d   :  { %v1441_v63 = vmul.f32 %v1438_v13, %v2260_v33 }
0x208a   :  { %v1444_v61 = vpop.permute.xlu1 %1443 }
0x208b   :  { %v1446_v62 = vmul.f32 %v1444_v61, %v1438_v13 }
0x208d   :  { %1448 = vrot.lane.b32.xlu2 %v1446_v62, %s1720_s23 }
0x2095   :  { %1483 = vrot.lane.b32.xlu2 %v2310_v16, %s1723_s7 }
0x20e7   :  { %v1449_v0 = vpop.permute.xlu2 %1448 }
0x20e8   :  { %v1451_v1 = vadd.f32 %v1449_v0, %v1441_v63 }
0x20ea   :  { %1689 = vtanh.f32 %v1451_v1 }
0x20ef   :  { %v1484_v33 = vpop.permute.xlu2 %1483 }
0x20f0   :  { %v1690_v23 = vpop.eup %1689  ;;  %v1493_v17 = vsel %vm85_vm1, %v2291_v45, %v1484_v33 }
0x20f1   :  { %1454 = vrot.lane.b32.xlu0 %v1690_v23, %s1719_s4 }
0x20f9   :  { %1486 = vrot.lane.b32.xlu0 %v1372_v46, %s1724_s20 }
0x2163   :  { %v1455_v25 = vpop.permute.xlu0 %1454 }
0x2164   :  { %v1457_v6 = vmul.f32 %v1455_v25, %v1438_v13 }
0x2166   :  { %1459 = vrot.lane.b32.xlu1 %v1457_v6, %s1720_s23 }
0x216b   :  { %v1487_v16 = vpop.permute.xlu0 %1486 }
0x216c   :  { %v1495_v18 = vsel %vm1494_vm9, %v1493_v17, %v1487_v16 }
0x21d8   :  { %v1460_v7 = vpop.permute.xlu1 %1459 }
0x21d9   :  { %1573 = vmatmul.msk.f32.vlgmr.msrb.gmra.mxu0 %vm241_vm2, %v1460_v7 }
0x2256   :  { %v1480_v10 = vpop.f32.mrf.mxu0 }
0x2257   :  { %v1481_v15 = vadd.f32 %v2288_v43, %v1480_v10 }
0x2259   :  { %1490 = vrot.lane.b32.xlu1 %v1481_v15, %s1725_s8 }
0x22cb   :  { %v1491_v19 = vpop.permute.xlu1 %1490 }
0x22cc   :  { %v1497_v43 = vsel %vm1496_vm0, %v1495_v18, %v1491_v19 }
0x22cd   :  { %1498 = vst.msk [vmem:[#allocation3] sm:$0xff] %vm962_vm13, %v1497_v43 }
0x22ce   :  { %1509 = dma.vmem_to_hbm [thread:$0]  %s1505_s29, 128, %s1507_s5, [#allocation4]  }
0x22cf   :  { %1717 = dma.done.wait [#allocation4], 128  }
0x22d0   :  { %1718 = vsyncadd [#allocation4], 4294967168 }
0x22d1   :  { %1514 = vsyncpa [#allocation4], 1 }

</bundles_post_ra>
